<compile_context>
chip_gen: v6e
topology: v6e:2x2x1
jax: 0.10.0
libtpu: 0.0.40
codegen_flags: <defaults>
</compile_context>

<pallas_src>
import math
import jax
import jax.numpy as jnp
from jax.experimental import pallas as pl
from jax.experimental.pallas import tpu as pltpu

# ---------------------------------------------------------------------------
# Synthetic deterministic stand-ins for the (undefined) cfg / BX modules.
# ---------------------------------------------------------------------------
LEN_WIDTH = (4.0, 8.0, 16.0)       # cell width per feature level
LEN_HEIGHT = (4.0, 8.0, 16.0)      # cell height per feature level
ANCHORS = (((1.5, 2.0), (3.0, 3.5), (5.0, 4.0)),
           ((4.0, 5.0), (6.0, 7.0), (9.0, 8.0)),
           ((8.0, 10.0), (12.0, 14.0), (18.0, 16.0)))
W_OBJ, W_NOOBJ, W_BOX, W_SEG = 1.0, 10.0, 3.0, 2.0
_EPS = 1e-7
_NEG_PAD = -1e4     # pad value whose BCE-with-logits(target=0) contribution is exactly 0
_NEG_BIG = -1e9     # effectively -inf for padded class rows


def _round_up(x, m):
    return -(-x // m) * m


def _atan_pos(x):
    """atan for x >= 0 from supported primitives.
    # TODO(synk): Mosaic has no native atan lowering; Hastings polynomial (~1e-5 abs err).
    """
    inv = x > 1.0
    t = jnp.where(inv, 1.0 / jnp.maximum(x, _EPS), x)
    t2 = t * t
    p = 0.9998660 + t2 * (-0.3302995 + t2 * (0.1801410 + t2 * (-0.0851330 + t2 * 0.0208351)))
    a = t * p
    return jnp.where(inv, (math.pi / 2.0) - a, a)


def _bce_logits_zero(x):
    # BCEWithLogits(x, target=0) = max(x,0) + log(1 + exp(-|x|))
    # TODO(synk): on v5e (single, slower EUP) this log+exp pair may bind before HBM on the
    #             full-grid sweep; a short polynomial in y=exp(-|x|) would halve EUP pushes.
    return jnp.maximum(x, 0.0) + jnp.log(1.0 + jnp.exp(-jnp.abs(x)))


# ---------------------------------------------------------------------------
# Kernel 1: tiled full-grid no-object BCE (lane-accumulated) + the positive-cell
#           box/objectness/class terms computed once on shard 0 / step 0.
# ---------------------------------------------------------------------------
def _make_det_kernel(len_w, len_h):
    def kernel(grid_obj_ref, pos_ref, cls_ref, clslab_ref, out_ref, acc_ref, pos_acc_ref):
        shard = pl.program_id(0)
        step = pl.program_id(1)

        @pl.when(step == 0)
        def _():
            acc_ref[...] = jnp.zeros_like(acc_ref)
            pos_acc_ref[...] = jnp.zeros_like(pos_acc_ref)

        # ---- (1) unmasked no-object BCE over this grid tile (bf16 in, f32 math).
        #      Lane-shaped accumulator: only a sublane reduce per step, no cross-lane
        #      reduction / masked sub-tile store in the hot loop.
        x = grid_obj_ref[...].astype(jnp.float32)
        acc_ref[...] += jnp.sum(_bce_logits_zero(x), axis=0, keepdims=True)

        # ---- positive-cell block: once, on shard 0 / step 0, so its ~60-op elementwise
        #      chain hides under the step-1 tile prefetch instead of extending the tail.
        @pl.when(jnp.logical_and(shard == 0, step == 0))
        def _():
            # slab rows: tx ty tw th | wg hg aw ah | gx1 gy1 gx2 gy2 | obj valid
            # TODO(synk): if N (positives) can reach >=1024, repack each field as dense
            #             (Npad//128,128) blocks instead of single-sublane rows.
            tx = pos_ref[0:1, :]
            ty = pos_ref[1:2, :]
            tw = pos_ref[2:3, :]
            th = pos_ref[3:4, :]
            wg = pos_ref[4:5, :]
            hg = pos_ref[5:6, :]
            aw = pos_ref[6:7, :]
            ah = pos_ref[7:8, :]
            gx1 = pos_ref[8:9, :]
            gy1 = pos_ref[9:10, :]
            gx2 = pos_ref[10:11, :]
            gy2 = pos_ref[11:12, :]
            ox = pos_ref[12:13, :]
            valid = pos_ref[13:14, :]

            # ---- (2) box decode (raw logits; exact sigmoid/divisions) + IoU / CIoU ----
            sx = 1.0 / (1.0 + jnp.exp(-tx))
            sy = 1.0 / (1.0 + jnp.exp(-ty))
            pcx = len_w * (sx + wg)
            pcy = len_h * (sy + hg)
            pcw = aw * jnp.exp(tw)
            pch = ah * jnp.exp(th)
            px1 = pcx - 0.5 * pcw
            px2 = pcx + 0.5 * pcw
            py1 = pcy - 0.5 * pch
            py2 = pcy + 0.5 * pch

            iw = jnp.maximum(jnp.minimum(px2, gx2) - jnp.maximum(px1, gx1), 0.0)
            ih = jnp.maximum(jnp.minimum(py2, gy2) - jnp.maximum(py1, gy1), 0.0)
            inter = iw * ih
            area_p = (px2 - px1) * (py2 - py1)
            area_g = (gx2 - gx1) * (gy2 - gy1)
            # plain IoU -> objectness target (eps avoids inf/NaN on degenerate boxes)
            iou_t = inter / (area_p + area_g - inter + _EPS)

            w1 = px2 - px1
            h1 = py2 - py1 + _EPS
            w2 = gx2 - gx1
            h2 = gy2 - gy1 + _EPS
            union_c = w1 * h1 + w2 * h2 - inter + _EPS
            iou_c = inter / union_c
            cw_ = jnp.maximum(px2, gx2) - jnp.minimum(px1, gx1)
            ch_ = jnp.maximum(py2, gy2) - jnp.minimum(py1, gy1)
            c2 = cw_ * cw_ + ch_ * ch_ + _EPS
            rho2 = ((gx1 + gx2 - px1 - px2) ** 2 + (gy1 + gy2 - py1 - py2) ** 2) * 0.25
            v = (4.0 / (math.pi ** 2)) * (_atan_pos(w2 / h2) - _atan_pos(w1 / h1)) ** 2
            alpha = v / (v - iou_c + (1.0 + _EPS))
            ciou = iou_c - (rho2 / c2 + v * alpha)
            lbox_sum = jnp.sum((1.0 - ciou) * valid, keepdims=True)

            # ---- (3) objectness BCE at positive cells against the IoU target ----
            bce_obj = jnp.maximum(ox, 0.0) - ox * iou_t + jnp.log(1.0 + jnp.exp(-jnp.abs(ox)))
            lobj_sum = jnp.sum(bce_obj * valid, keepdims=True)

            # ---- (4) class cross-entropy at positive cells (classes on sublane axis) ----
            cl = cls_ref[...]                                  # (NCPAD, Npad)
            lbl = clslab_ref[...]                              # (1, Npad) int32
            cmax = jnp.max(cl, axis=0, keepdims=True)
            clse = cmax + jnp.log(jnp.sum(jnp.exp(cl - cmax), axis=0, keepdims=True))
            cidx = jax.lax.broadcasted_iota(jnp.int32, cl.shape, 0)
            picked = jnp.sum(jnp.where(cidx == lbl, cl, 0.0), axis=0, keepdims=True)
            lcls_sum = jnp.sum((clse - picked) * valid, keepdims=True)

            # ---- no-object correction: subtract the positive cells that the unmasked
            #      full-grid sum included (bf16-quantized so it cancels per-term) ----
            oxq = ox.astype(jnp.bfloat16).astype(jnp.float32)
            noobj_corr = jnp.sum(_bce_logits_zero(oxq) * valid, keepdims=True)

            lanes = jax.lax.broadcasted_iota(jnp.int32, pos_acc_ref.shape, 1)
            pos_acc_ref[...] = (jnp.where(lanes == 0, -noobj_corr, 0.0)
                                + jnp.where(lanes == 1, lbox_sum, 0.0)
                                + jnp.where(lanes == 2, lobj_sum, 0.0)
                                + jnp.where(lanes == 3, lcls_sum, 0.0))

        @pl.when(step == pl.num_programs(1) - 1)
        def _():
            total = jnp.sum(acc_ref[...], keepdims=True)        # single cross-lane reduce
            lanes = jax.lax.broadcasted_iota(jnp.int32, out_ref.shape, 1)
            out_ref[...] = pos_acc_ref[...] + jnp.where(lanes == 0, total, 0.0)
    return kernel


# ---------------------------------------------------------------------------
# Kernel 2: segmentation cross-entropy, grid over (batch, pixel-chunk).
#           Labels < 0 are ignored (nn.CrossEntropyLoss ignore_index semantics).
# ---------------------------------------------------------------------------
def _seg_kernel(logits_ref, label_ref, out_ref, acc_ce, acc_cnt):
    c = pl.program_id(1)

    @pl.when(c == 0)
    def _():
        acc_ce[...] = jnp.zeros_like(acc_ce)
        acc_cnt[...] = jnp.zeros_like(acc_cnt)

    sl = logits_ref[...].astype(jnp.float32)        # (Cseg, TILE_P)
    lbl = label_ref[...]                            # (1, TILE_P) int32
    valid = (lbl >= 0).astype(jnp.float32)          # handles padding (-1) and ignore (-100)
    smax = jnp.max(sl, axis=0, keepdims=True)
    slse = smax + jnp.log(jnp.sum(jnp.exp(sl - smax), axis=0, keepdims=True))
    cidx = jax.lax.broadcasted_iota(jnp.int32, sl.shape, 0)
    picked = jnp.sum(jnp.where(cidx == lbl, sl, 0.0), axis=0, keepdims=True)
    # lane-shaped accumulators: pure VPU elementwise adds in the hot loop
    acc_ce[...] += (slse - picked) * valid
    acc_cnt[...] += valid

    @pl.when(c == pl.num_programs(1) - 1)
    def _():
        ce = jnp.sum(acc_ce[...], keepdims=True)
        cnt = jnp.sum(acc_cnt[...], keepdims=True)
        lanes = jax.lax.broadcasted_iota(jnp.int32, out_ref.shape, 1)
        out_ref[...] = jnp.where(lanes == 0, ce, 0.0) + jnp.where(lanes == 1, cnt, 0.0)


# ---------------------------------------------------------------------------
# Wrapper (glue): data-dependent gathers / scatter-free packing + final weighting.
# ---------------------------------------------------------------------------
def yolo_loss_v2(prd_f, target_f, indices_f, f_idx, seg, seg_label):
    # TODO(synk): forward only; if this loss is backpropagated, a custom_vjp with explicit
    #             backward kernels should wrap these pallas_calls.
    B, A, H, W, C = prd_f.shape
    n_cls = C - 5
    b, a, h, w = indices_f
    N = int(b.shape[0])

    len_w = float(LEN_WIDTH[f_idx])
    len_h = float(LEN_HEIGHT[f_idx])
    anchors = jnp.asarray(ANCHORS, jnp.float32)[f_idx]            # (A, 2)

    # ---- positive-cell gathers (small, data-dependent -> plain JAX glue) ----
    ps = prd_f[b, a, h, w].astype(jnp.float32)                    # (N, C) raw logits
    ts = target_f[b, a, h, w, 1:5].astype(jnp.float32)            # (N, 4) gt xyxy
    cls_lab = target_f[b, a, h, w, 9].astype(jnp.int32)           # (N,)
    anc = anchors[a]                                              # (N, 2)

    Npad = max(128, _round_up(N, 128))                            # lane-dense positives
    pos = jnp.zeros((16, Npad), jnp.float32)
    pos = pos.at[6:8, :].set(1.0)        # anchor w/h pad -> 1 (keeps padded math finite)
    pos = pos.at[10:12, :].set(1.0)      # gt x2/y2 pad -> 1
    pos_rows = jnp.stack([ps[:, 0], ps[:, 1], ps[:, 2], ps[:, 3],
                          w.astype(jnp.float32), h.astype(jnp.float32),
                          anc[:, 0], anc[:, 1],
                          ts[:, 0], ts[:, 1], ts[:, 2], ts[:, 3],
                          ps[:, 4], jnp.ones((N,), jnp.float32)], axis=0)   # (14, N)
    pos = pos.at[:14, :N].set(pos_rows)

    NCPAD = max(8, _round_up(n_cls, 8))
    cls_logits = jnp.full((NCPAD, Npad), _NEG_BIG, jnp.float32).at[:n_cls, :N].set(ps[:, 5:].T)
    cls_labels = jnp.zeros((1, Npad), jnp.int32).at[0, :N].set(cls_lab)

    # ---- full-grid objectness logits: bf16, padded to tile/shard-aligned (rows, 128) ----
    M = B * A * H * W
    rows_needed = -(-M // 128)
    rows16 = _round_up(rows_needed, 16)                           # bf16 sublane tile = 16
    TILE_GR = min(2048, rows16)                                   # big tiles amortize per-step cost
    n_tiles = -(-rows16 // TILE_GR)
    SHARDS = 2 if n_tiles >= 2 else 1                             # outer parallel axis (v7x 2 TCs)
    T_g = -(-n_tiles // SHARDS)
    rows_pad = SHARDS * T_g * TILE_GR

    grid_obj = prd_f[..., 4].reshape(-1).astype(jnp.bfloat16)
    grid_obj = jnp.pad(grid_obj, (0, rows_pad * 128 - M),
                       constant_values=_NEG_PAD).reshape(rows_pad, 128)

    det = pl.pallas_call(
        _make_det_kernel(len_w, len_h),
        out_shape=jax.ShapeDtypeStruct((1, SHARDS * 128), jnp.float32),
        grid=(SHARDS, T_g),
        in_specs=[
            pl.BlockSpec((TILE_GR, 128), lambda s, i: (s * T_g + i, 0)),  # streamed objectness
            pl.BlockSpec((16, Npad), lambda s, i: (0, 0)),                # resident positive slab
            pl.BlockSpec((NCPAD, Npad), lambda s, i: (0, 0)),             # resident class logits
            pl.BlockSpec((1, Npad), lambda s, i: (0, 0)),                 # resident class labels
        ],
        out_specs=pl.BlockSpec((1, 128), lambda s, i: (0, s)),
        scratch_shapes=[pltpu.VMEM((1, 128), jnp.float32),                # lane accumulator
                        pltpu.VMEM((1, 128), jnp.float32)],               # positive-cell partials
        compiler_params=pltpu.CompilerParams(
            dimension_semantics=("parallel", "arbitrary"),
            # let XLA fuse the channel-4 slice + bf16 cast + pad into the streamed input
            allow_input_fusion=[True, False, False, False]),
    )(grid_obj, pos, cls_logits, cls_labels)

    det_mat = det.reshape(SHARDS, 128)
    sums = jnp.sum(det_mat, axis=0)                               # reduce per-shard partials

    # ---- segmentation: NCHW kept (free reshape), original dtype fed, tiled pixels ----
    Bs, Cseg, Hs, Ws = seg.shape
    P_hw = Hs * Ws
    TILE_P = min(8192, _round_up(P_hw, 128))
    P_pad = _round_up(P_hw, TILE_P)
    seg_logits = seg.reshape(Bs, Cseg, P_hw)                      # no pre-cast: cast in-kernel
    seg_lab = seg_label.astype(jnp.int32).reshape(Bs, 1, P_hw)
    if P_pad != P_hw:
        seg_logits = jnp.pad(seg_logits, ((0, 0), (0, 0), (0, P_pad - P_hw)))
        seg_lab = jnp.pad(seg_lab, ((0, 0), (0, 0), (0, P_pad - P_hw)), constant_values=-1)
    NCHUNK = P_pad // TILE_P

    # TODO(synk): if bundle dumps still show exposed DMA, sweep pipeline_mode=pl.Buffered(3)
    #             on the streamed logits BlockSpec.
    seg_out = pl.pallas_call(
        _seg_kernel,
        out_shape=jax.ShapeDtypeStruct((1, Bs * 128), jnp.float32),
        grid=(Bs, NCHUNK),
        in_specs=[
            pl.BlockSpec((None, Cseg, TILE_P), lambda bb, cc: (bb, 0, cc)),
            pl.BlockSpec((None, 1, TILE_P), lambda bb, cc: (bb, 0, cc)),
        ],
        out_specs=pl.BlockSpec((1, 128), lambda bb, cc: (0, bb)),
        scratch_shapes=[pltpu.VMEM((1, TILE_P), jnp.float32),
                        pltpu.VMEM((1, TILE_P), jnp.float32)],
        compiler_params=pltpu.CompilerParams(
            dimension_semantics=("parallel", "arbitrary"),        # batch axis uses v7x's 2nd TC
            allow_input_fusion=[True, True]),
    )(seg_logits, seg_lab)

    seg_mat = seg_out.reshape(Bs, 128)
    lseg = jnp.sum(seg_mat[:, 0]) / jnp.maximum(jnp.sum(seg_mat[:, 1]), 1.0)

    lnoobj = sums[0] / (M - N)   # shard sums already include the positive-cell correction
    lbox = sums[1] / N
    lobj = sums[2] / N
    lcls = sums[3] / N
    # TODO(synk): assumes unique positive indices (same assumption the reference scatter makes).
    return W_BOX * lbox + W_OBJ * lobj + W_NOOBJ * lnoobj + lcls + W_SEG * lseg


if __name__ == "__main__":
    key = jax.random.PRNGKey(0)
    k1, k2, k3, k4 = jax.random.split(key, 4)

    B, A, H, W, n_cls = 2, 3, 8, 8, 4
    C = 5 + n_cls
    f_idx = 0

    prd_f = jax.random.normal(k1, (B, A, H, W, C), jnp.float32) * 0.5
    target_f = jnp.zeros((B, A, H, W, 10), jnp.float32)

    # 6 unique positive anchor cells
    b_idx = jnp.array([0, 0, 0, 1, 1, 1], jnp.int32)
    a_idx = jnp.array([0, 1, 2, 0, 1, 2], jnp.int32)
    h_idx = jnp.array([1, 3, 5, 2, 4, 6], jnp.int32)
    w_idx = jnp.array([2, 4, 6, 1, 3, 5], jnp.int32)

    lw, lh = LEN_WIDTH[f_idx], LEN_HEIGHT[f_idx]
    sizes = jax.random.uniform(k2, (6, 2), minval=2.0, maxval=8.0)
    cx = lw * (w_idx.astype(jnp.float32) + 0.5)
    cy = lh * (h_idx.astype(jnp.float32) + 0.5)
    boxes = jnp.stack([cx - sizes[:, 0] / 2, cy - sizes[:, 1] / 2,
                       cx + sizes[:, 0] / 2, cy + sizes[:, 1] / 2], axis=1)
    cls_ids = jnp.array([0, 1, 2, 3, 1, 2], jnp.float32)

    target_f = target_f.at[b_idx, a_idx, h_idx, w_idx, 0].set(1.0)
    target_f = target_f.at[b_idx, a_idx, h_idx, w_idx, 1:5].set(boxes)
    target_f = target_f.at[b_idx, a_idx, h_idx, w_idx, 5:9].set(boxes)
    target_f = target_f.at[b_idx, a_idx, h_idx, w_idx, 9].set(cls_ids)

    Cseg, Hs, Ws = 4, 16, 16
    seg = jax.random.normal(k3, (B, Cseg, Hs, Ws), jnp.float32)
    seg_label = jax.random.randint(k4, (B, Hs, Ws), 0, Cseg, dtype=jnp.int32)

    loss_fn = jax.jit(yolo_loss_v2, static_argnums=(3,))
    loss = loss_fn(prd_f, target_f, (b_idx, a_idx, h_idx, w_idx), f_idx, seg, seg_label)
    jax.block_until_ready(loss)
    print("KERNEL_OK")
</pallas_src>

<mosaic_0001>
module attributes {stable_mosaic.version = 11 : i64} {
  func.func @kernel(%arg0: i32, %arg1: i32, %arg2: memref<16x128xbf16, #tpu.memory_space<vmem>>, %arg3: memref<16x128xf32, #tpu.memory_space<vmem>>, %arg4: memref<8x128xf32, #tpu.memory_space<vmem>>, %arg5: memref<1x128xi32, #tpu.memory_space<vmem>>, %arg6: memref<1x128xf32, #tpu.memory_space<vmem>>, %arg7: memref<1x128xf32, #tpu.memory_space<vmem>>, %arg8: memref<1x128xf32, #tpu.memory_space<vmem>>) attributes {dimension_semantics = [#tpu.dimension_semantics<parallel>, #tpu.dimension_semantics<arbitrary>], iteration_bounds = array<i64: 1, 1>, scalar_prefetch = 0 : i64, scratch_operands = 2 : i64, tpu.core_type = #tpu.core_type<tc>, window_params = [{transform_indices = @transform_0, window_bounds = array<i64: 16, 128>}, {pipeline_mode = #tpu.pipeline_mode<synchronous>, transform_indices = @transform_1, window_bounds = array<i64: 16, 128>}, {pipeline_mode = #tpu.pipeline_mode<synchronous>, transform_indices = @transform_2, window_bounds = array<i64: 8, 128>}, {pipeline_mode = #tpu.pipeline_mode<synchronous>, transform_indices = @transform_3, window_bounds = array<i64: 1, 128>}, {transform_indices = @transform_4, window_bounds = array<i64: 1, 128>}]} {
    %c0_i32 = arith.constant 0 : i32
    %0 = arith.cmpi eq, %arg1, %c0_i32 : i32
    %1 = arith.extui %0 : i1 to i32
    %c0_i32_0 = arith.constant 0 : i32
    %2 = arith.cmpi ne, %1, %c0_i32_0 : i32
    scf.if %2 {
      %cst_14 = arith.constant 0.000000e+00 : f32
      %28 = vector.broadcast %cst_14 : f32 to vector<1x128xf32>
      %c0_15 = arith.constant 0 : index
      %c0_16 = arith.constant 0 : index
      %29 = vector.load %arg7[%c0_15, %c0_16] : memref<1x128xf32, #tpu.memory_space<vmem>>, vector<1x128xf32>
      tpu.vector_store %arg7[%c0_15, %c0_16], %28 {strides = array<i32>} : memref<1x128xf32, #tpu.memory_space<vmem>>, vector<1x128xf32>,
      %cst_17 = arith.constant 0.000000e+00 : f32
      %30 = vector.broadcast %cst_17 : f32 to vector<1x128xf32>
      %c0_18 = arith.constant 0 : index
      %c0_19 = arith.constant 0 : index
      %31 = vector.load %arg8[%c0_18, %c0_19] : memref<1x128xf32, #tpu.memory_space<vmem>>, vector<1x128xf32>
      tpu.vector_store %arg8[%c0_18, %c0_19], %30 {strides = array<i32>} : memref<1x128xf32, #tpu.memory_space<vmem>>, vector<1x128xf32>,
    } else {
    }
    %c0 = arith.constant 0 : index
    %c0_1 = arith.constant 0 : index
    %3 = vector.load %arg2[%c0, %c0_1] : memref<16x128xbf16, #tpu.memory_space<vmem>>, vector<16x128xbf16>
    %4 = arith.extf %3 : vector<16x128xbf16> to vector<16x128xf32>
    %c0_2 = arith.constant 0 : index
    %c0_3 = arith.constant 0 : index
    %5 = vector.load %arg7[%c0_2, %c0_3] : memref<1x128xf32, #tpu.memory_space<vmem>>, vector<1x128xf32>
    %cst = arith.constant 0.000000e+00 : f32
    %6 = vector.broadcast %cst : f32 to vector<16x128xf32>
    %7 = arith.maximumf %4, %6 : vector<16x128xf32>
    %8 = math.absf %4 : vector<16x128xf32>
    %cst_4 = arith.constant 0.000000e+00 : f32
    %9 = vector.broadcast %cst_4 : f32 to vector<16x128xf32>
    %10 = arith.subf %9, %8 : vector<16x128xf32>
    %11 = math.exp %10 : vector<16x128xf32>
    %cst_5 = arith.constant 1.000000e+00 : f32
    %12 = vector.broadcast %cst_5 : f32 to vector<16x128xf32>
    %13 = arith.addf %12, %11 : vector<16x128xf32>
    %14 = math.log %13 : vector<16x128xf32>
    %15 = arith.addf %7, %14 : vector<16x128xf32>
    %cst_6 = arith.constant dense<0.000000e+00> : vector<128xf32>
    %16 = vector.multi_reduction <add>, %15, %cst_6 [0] : vector<16x128xf32> to vector<128xf32>
    %17 = vector.shape_cast %16 : vector<128xf32> to vector<1x128xf32>
    %18 = arith.addf %5, %17 : vector<1x128xf32>
    %c0_7 = arith.constant 0 : index
    %c0_8 = arith.constant 0 : index
    %19 = vector.load %arg7[%c0_7, %c0_8] : memref<1x128xf32, #tpu.memory_space<vmem>>, vector<1x128xf32>
    tpu.vector_store %arg7[%c0_7, %c0_8], %18 {strides = array<i32>} : memref<1x128xf32, #tpu.memory_space<vmem>>, vector<1x128xf32>,
    %c0_i32_9 = arith.constant 0 : i32
    %20 = arith.cmpi eq, %arg0, %c0_i32_9 : i32
    %c0_i32_10 = arith.constant 0 : i32
    %21 = arith.cmpi eq, %arg1, %c0_i32_10 : i32
    %22 = arith.andi %20, %21 : i1
    %23 = arith.extui %22 : i1 to i32
    %c0_i32_11 = arith.constant 0 : i32
    %24 = arith.cmpi ne, %23, %c0_i32_11 : i32
    scf.if %24 {
      %c0_14 = arith.constant 0 : index
      %c0_15 = arith.constant 0 : index
      %28 = vector.load %arg3[%c0_14, %c0_15] : memref<16x128xf32, #tpu.memory_space<vmem>>, vector<1x128xf32>
      %c1 = arith.constant 1 : index
      %c0_16 = arith.constant 0 : index
      %29 = vector.load %arg3[%c1, %c0_16] : memref<16x128xf32, #tpu.memory_space<vmem>>, vector<1x128xf32>
      %c2 = arith.constant 2 : index
      %c0_17 = arith.constant 0 : index
      %30 = vector.load %arg3[%c2, %c0_17] : memref<16x128xf32, #tpu.memory_space<vmem>>, vector<1x128xf32>
      %c3 = arith.constant 3 : index
      %c0_18 = arith.constant 0 : index
      %31 = vector.load %arg3[%c3, %c0_18] : memref<16x128xf32, #tpu.memory_space<vmem>>, vector<1x128xf32>
      %c4 = arith.constant 4 : index
      %c0_19 = arith.constant 0 : index
      %32 = vector.load %arg3[%c4, %c0_19] : memref<16x128xf32, #tpu.memory_space<vmem>>, vector<1x128xf32>
      %c5 = arith.constant 5 : index
      %c0_20 = arith.constant 0 : index
      %33 = vector.load %arg3[%c5, %c0_20] : memref<16x128xf32, #tpu.memory_space<vmem>>, vector<1x128xf32>
      %c6 = arith.constant 6 : index
      %c0_21 = arith.constant 0 : index
      %34 = vector.load %arg3[%c6, %c0_21] : memref<16x128xf32, #tpu.memory_space<vmem>>, vector<1x128xf32>
      %c7 = arith.constant 7 : index
      %c0_22 = arith.constant 0 : index
      %35 = vector.load %arg3[%c7, %c0_22] : memref<16x128xf32, #tpu.memory_space<vmem>>, vector<1x128xf32>
      %c8 = arith.constant 8 : index
      %c0_23 = arith.constant 0 : index
      %36 = vector.load %arg3[%c8, %c0_23] : memref<16x128xf32, #tpu.memory_space<vmem>>, vector<1x128xf32>
      %c9 = arith.constant 9 : index
      %c0_24 = arith.constant 0 : index
      %37 = vector.load %arg3[%c9, %c0_24] : memref<16x128xf32, #tpu.memory_space<vmem>>, vector<1x128xf32>
      %c10 = arith.constant 10 : index
      %c0_25 = arith.constant 0 : index
      %38 = vector.load %arg3[%c10, %c0_25] : memref<16x128xf32, #tpu.memory_space<vmem>>, vector<1x128xf32>
      %c11 = arith.constant 11 : index
      %c0_26 = arith.constant 0 : index
      %39 = vector.load %arg3[%c11, %c0_26] : memref<16x128xf32, #tpu.memory_space<vmem>>, vector<1x128xf32>
      %c12 = arith.constant 12 : index
      %c0_27 = arith.constant 0 : index
      %40 = vector.load %arg3[%c12, %c0_27] : memref<16x128xf32, #tpu.memory_space<vmem>>, vector<1x128xf32>
      %c13 = arith.constant 13 : index
      %c0_28 = arith.constant 0 : index
      %41 = vector.load %arg3[%c13, %c0_28] : memref<16x128xf32, #tpu.memory_space<vmem>>, vector<1x128xf32>
      %cst_29 = arith.constant 0.000000e+00 : f32
      %42 = vector.broadcast %cst_29 : f32 to vector<1x128xf32>
      %43 = arith.subf %42, %28 : vector<1x128xf32>
      %44 = math.exp %43 : vector<1x128xf32>
      %cst_30 = arith.constant 1.000000e+00 : f32
      %45 = vector.broadcast %cst_30 : f32 to vector<1x128xf32>
      %46 = arith.addf %45, %44 : vector<1x128xf32>
      %cst_31 = arith.constant 1.000000e+00 : f32
      %47 = vector.broadcast %cst_31 : f32 to vector<1x128xf32>
      %48 = arith.divf %47, %46 : vector<1x128xf32>
      %cst_32 = arith.constant 0.000000e+00 : f32
      %49 = vector.broadcast %cst_32 : f32 to vector<1x128xf32>
      %50 = arith.subf %49, %29 : vector<1x128xf32>
      %51 = math.exp %50 : vector<1x128xf32>
      %cst_33 = arith.constant 1.000000e+00 : f32
      %52 = vector.broadcast %cst_33 : f32 to vector<1x128xf32>
      %53 = arith.addf %52, %51 : vector<1x128xf32>
      %cst_34 = arith.constant 1.000000e+00 : f32
      %54 = vector.broadcast %cst_34 : f32 to vector<1x128xf32>
      %55 = arith.divf %54, %53 : vector<1x128xf32>
      %56 = arith.addf %48, %32 : vector<1x128xf32>
      %cst_35 = arith.constant 4.000000e+00 : f32
      %57 = vector.broadcast %cst_35 : f32 to vector<1x128xf32>
      %58 = arith.mulf %57, %56 : vector<1x128xf32>
      %59 = arith.addf %55, %33 : vector<1x128xf32>
      %cst_36 = arith.constant 4.000000e+00 : f32
      %60 = vector.broadcast %cst_36 : f32 to vector<1x128xf32>
      %61 = arith.mulf %60, %59 : vector<1x128xf32>
      %62 = math.exp %30 : vector<1x128xf32>
      %63 = arith.mulf %34, %62 : vector<1x128xf32>
      %64 = math.exp %31 : vector<1x128xf32>
      %65 = arith.mulf %35, %64 : vector<1x128xf32>
      %cst_37 = arith.constant 5.000000e-01 : f32
      %66 = vector.broadcast %cst_37 : f32 to vector<1x128xf32>
      %67 = arith.mulf %66, %63 : vector<1x128xf32>
      %68 = arith.subf %58, %67 : vector<1x128xf32>
      %cst_38 = arith.constant 5.000000e-01 : f32
      %69 = vector.broadcast %cst_38 : f32 to vector<1x128xf32>
      %70 = arith.mulf %69, %63 : vector<1x128xf32>
      %71 = arith.addf %58, %70 : vector<1x128xf32>
      %cst_39 = arith.constant 5.000000e-01 : f32
      %72 = vector.broadcast %cst_39 : f32 to vector<1x128xf32>
      %73 = arith.mulf %72, %65 : vector<1x128xf32>
      %74 = arith.subf %61, %73 : vector<1x128xf32>
      %cst_40 = arith.constant 5.000000e-01 : f32
      %75 = vector.broadcast %cst_40 : f32 to vector<1x128xf32>
      %76 = arith.mulf %75, %65 : vector<1x128xf32>
      %77 = arith.addf %61, %76 : vector<1x128xf32>
      %78 = arith.minimumf %71, %38 : vector<1x128xf32>
      %79 = arith.maximumf %68, %36 : vector<1x128xf32>
      %80 = arith.subf %78, %79 : vector<1x128xf32>
      %cst_41 = arith.constant 0.000000e+00 : f32
      %81 = vector.broadcast %cst_41 : f32 to vector<1x128xf32>
      %82 = arith.maximumf %80, %81 : vector<1x128xf32>
      %83 = arith.minimumf %77, %39 : vector<1x128xf32>
      %84 = arith.maximumf %74, %37 : vector<1x128xf32>
      %85 = arith.subf %83, %84 : vector<1x128xf32>
      %cst_42 = arith.constant 0.000000e+00 : f32
      %86 = vector.broadcast %cst_42 : f32 to vector<1x128xf32>
      %87 = arith.maximumf %85, %86 : vector<1x128xf32>
      %88 = arith.mulf %82, %87 : vector<1x128xf32>
      %89 = arith.subf %71, %68 : vector<1x128xf32>
      %90 = arith.subf %77, %74 : vector<1x128xf32>
      %91 = arith.mulf %89, %90 : vector<1x128xf32>
      %92 = arith.subf %38, %36 : vector<1x128xf32>
      %93 = arith.subf %39, %37 : vector<1x128xf32>
      %94 = arith.mulf %92, %93 : vector<1x128xf32>
      %95 = arith.addf %91, %94 : vector<1x128xf32>
      %96 = arith.subf %95, %88 : vector<1x128xf32>
      %cst_43 = arith.constant 1.000000e-07 : f32
      %97 = vector.broadcast %cst_43 : f32 to vector<1x128xf32>
      %98 = arith.addf %96, %97 : vector<1x128xf32>
      %99 = arith.divf %88, %98 : vector<1x128xf32>
      %100 = arith.subf %71, %68 : vector<1x128xf32>
      %101 = arith.subf %77, %74 : vector<1x128xf32>
      %cst_44 = arith.constant 1.000000e-07 : f32
      %102 = vector.broadcast %cst_44 : f32 to vector<1x128xf32>
      %103 = arith.addf %101, %102 : vector<1x128xf32>
      %104 = arith.subf %38, %36 : vector<1x128xf32>
      %105 = arith.subf %39, %37 : vector<1x128xf32>
      %cst_45 = arith.constant 1.000000e-07 : f32
      %106 = vector.broadcast %cst_45 : f32 to vector<1x128xf32>
      %107 = arith.addf %105, %106 : vector<1x128xf32>
      %108 = arith.mulf %100, %103 : vector<1x128xf32>
      %109 = arith.mulf %104, %107 : vector<1x128xf32>
      %110 = arith.addf %108, %109 : vector<1x128xf32>
      %111 = arith.subf %110, %88 : vector<1x128xf32>
      %cst_46 = arith.constant 1.000000e-07 : f32
      %112 = vector.broadcast %cst_46 : f32 to vector<1x128xf32>
      %113 = arith.addf %111, %112 : vector<1x128xf32>
      %114 = arith.divf %88, %113 : vector<1x128xf32>
      %115 = arith.maximumf %71, %38 : vector<1x128xf32>
      %116 = arith.minimumf %68, %36 : vector<1x128xf32>
      %117 = arith.subf %115, %116 : vector<1x128xf32>
      %118 = arith.maximumf %77, %39 : vector<1x128xf32>
      %119 = arith.minimumf %74, %37 : vector<1x128xf32>
      %120 = arith.subf %118, %119 : vector<1x128xf32>
      %121 = arith.mulf %117, %117 : vector<1x128xf32>
      %122 = arith.mulf %120, %120 : vector<1x128xf32>
      %123 = arith.addf %121, %122 : vector<1x128xf32>
      %cst_47 = arith.constant 1.000000e-07 : f32
      %124 = vector.broadcast %cst_47 : f32 to vector<1x128xf32>
      %125 = arith.addf %123, %124 : vector<1x128xf32>
      %126 = arith.addf %36, %38 : vector<1x128xf32>
      %127 = arith.subf %126, %68 : vector<1x128xf32>
      %128 = arith.subf %127, %71 : vector<1x128xf32>
      %129 = arith.mulf %128, %128 : vector<1x128xf32>
      %130 = arith.addf %37, %39 : vector<1x128xf32>
      %131 = arith.subf %130, %74 : vector<1x128xf32>
      %132 = arith.subf %131, %77 : vector<1x128xf32>
      %133 = arith.mulf %132, %132 : vector<1x128xf32>
      %134 = arith.addf %129, %133 : vector<1x128xf32>
      %cst_48 = arith.constant 2.500000e-01 : f32
      %135 = vector.broadcast %cst_48 : f32 to vector<1x128xf32>
      %136 = arith.mulf %134, %135 : vector<1x128xf32>
      %137 = arith.divf %104, %107 : vector<1x128xf32>
      %cst_49 = arith.constant 1.000000e+00 : f32
      %138 = vector.broadcast %cst_49 : f32 to vector<1x128xf32>
      %139 = arith.cmpf ogt, %137, %138 : vector<1x128xf32>
      %cst_50 = arith.constant 1.000000e-07 : f32
      %140 = vector.broadcast %cst_50 : f32 to vector<1x128xf32>
      %141 = arith.maximumf %137, %140 : vector<1x128xf32>
      %cst_51 = arith.constant 1.000000e+00 : f32
      %142 = vector.broadcast %cst_51 : f32 to vector<1x128xf32>
      %143 = arith.divf %142, %141 : vector<1x128xf32>
      %144 = arith.select %139, %143, %137 : vector<1x128xi1>, vector<1x128xf32>
      %145 = arith.mulf %144, %144 : vector<1x128xf32>
      %cst_52 = arith.constant 2.083510e-02 : f32
      %146 = vector.broadcast %cst_52 : f32 to vector<1x128xf32>
      %147 = arith.mulf %145, %146 : vector<1x128xf32>
      %cst_53 = arith.constant -8.513300e-02 : f32
      %148 = vector.broadcast %cst_53 : f32 to vector<1x128xf32>
      %149 = arith.addf %148, %147 : vector<1x128xf32>
      %150 = arith.mulf %145, %149 : vector<1x128xf32>
      %cst_54 = arith.constant 1.801410e-01 : f32
      %151 = vector.broadcast %cst_54 : f32 to vector<1x128xf32>
      %152 = arith.addf %151, %150 : vector<1x128xf32>
      %153 = arith.mulf %145, %152 : vector<1x128xf32>
      %cst_55 = arith.constant -0.330299497 : f32
      %154 = vector.broadcast %cst_55 : f32 to vector<1x128xf32>
      %155 = arith.addf %154, %153 : vector<1x128xf32>
      %156 = arith.mulf %145, %155 : vector<1x128xf32>
      %cst_56 = arith.constant 9.998660e-01 : f32
      %157 = vector.broadcast %cst_56 : f32 to vector<1x128xf32>
      %158 = arith.addf %157, %156 : vector<1x128xf32>
      %159 = arith.mulf %144, %158 : vector<1x128xf32>
      %cst_57 = arith.constant 1.57079637 : f32
      %160 = vector.broadcast %cst_57 : f32 to vector<1x128xf32>
      %161 = arith.subf %160, %159 : vector<1x128xf32>
      %162 = arith.select %139, %161, %159 : vector<1x128xi1>, vector<1x128xf32>
      %163 = arith.divf %100, %103 : vector<1x128xf32>
      %cst_58 = arith.constant 1.000000e+00 : f32
      %164 = vector.broadcast %cst_58 : f32 to vector<1x128xf32>
      %165 = arith.cmpf ogt, %163, %164 : vector<1x128xf32>
      %cst_59 = arith.constant 1.000000e-07 : f32
      %166 = vector.broadcast %cst_59 : f32 to vector<1x128xf32>
      %167 = arith.maximumf %163, %166 : vector<1x128xf32>
      %cst_60 = arith.constant 1.000000e+00 : f32
      %168 = vector.broadcast %cst_60 : f32 to vector<1x128xf32>
      %169 = arith.divf %168, %167 : vector<1x128xf32>
      %170 = arith.select %165, %169, %163 : vector<1x128xi1>, vector<1x128xf32>
      %171 = arith.mulf %170, %170 : vector<1x128xf32>
      %cst_61 = arith.constant 2.083510e-02 : f32
      %172 = vector.broadcast %cst_61 : f32 to vector<1x128xf32>
      %173 = arith.mulf %171, %172 : vector<1x128xf32>
      %cst_62 = arith.constant -8.513300e-02 : f32
      %174 = vector.broadcast %cst_62 : f32 to vector<1x128xf32>
      %175 = arith.addf %174, %173 : vector<1x128xf32>
      %176 = arith.mulf %171, %175 : vector<1x128xf32>
      %cst_63 = arith.constant 1.801410e-01 : f32
      %177 = vector.broadcast %cst_63 : f32 to vector<1x128xf32>
      %178 = arith.addf %177, %176 : vector<1x128xf32>
      %179 = arith.mulf %171, %178 : vector<1x128xf32>
      %cst_64 = arith.constant -0.330299497 : f32
      %180 = vector.broadcast %cst_64 : f32 to vector<1x128xf32>
      %181 = arith.addf %180, %179 : vector<1x128xf32>
      %182 = arith.mulf %171, %181 : vector<1x128xf32>
      %cst_65 = arith.constant 9.998660e-01 : f32
      %183 = vector.broadcast %cst_65 : f32 to vector<1x128xf32>
      %184 = arith.addf %183, %182 : vector<1x128xf32>
      %185 = arith.mulf %170, %184 : vector<1x128xf32>
      %cst_66 = arith.constant 1.57079637 : f32
      %186 = vector.broadcast %cst_66 : f32 to vector<1x128xf32>
      %187 = arith.subf %186, %185 : vector<1x128xf32>
      %188 = arith.select %165, %187, %185 : vector<1x128xi1>, vector<1x128xf32>
      %189 = arith.subf %162, %188 : vector<1x128xf32>
      %190 = arith.mulf %189, %189 : vector<1x128xf32>
      %cst_67 = arith.constant 0.405284733 : f32
      %191 = vector.broadcast %cst_67 : f32 to vector<1x128xf32>
      %192 = arith.mulf %191, %190 : vector<1x128xf32>
      %193 = arith.subf %192, %114 : vector<1x128xf32>
      %cst_68 = arith.constant 1.00000012 : f32
      %194 = vector.broadcast %cst_68 : f32 to vector<1x128xf32>
      %195 = arith.addf %193, %194 : vector<1x128xf32>
      %196 = arith.divf %192, %195 : vector<1x128xf32>
      %197 = arith.divf %136, %125 : vector<1x128xf32>
      %198 = arith.mulf %192, %196 : vector<1x128xf32>
      %199 = arith.addf %197, %198 : vector<1x128xf32>
      %200 = arith.subf %114, %199 : vector<1x128xf32>
      %cst_69 = arith.constant 1.000000e+00 : f32
      %201 = vector.broadcast %cst_69 : f32 to vector<1x128xf32>
      %202 = arith.subf %201, %200 : vector<1x128xf32>
      %203 = arith.mulf %202, %41 : vector<1x128xf32>
      %204 = vector.shape_cast %203 : vector<1x128xf32> to vector<1x1x128xf32>
      %cst_70 = arith.constant dense<0.000000e+00> : vector<1xf32>
      %205 = vector.multi_reduction <add>, %204, %cst_70 [1, 2] : vector<1x1x128xf32> to vector<1xf32>
      %206 = vector.shape_cast %205 : vector<1xf32> to vector<1x1x1xf32>
      %207 = vector.extract %206[0, 0, 0] : f32 from vector<1x1x1xf32>
      %208 = vector.broadcast %207 : f32 to vector<1x1xf32>
      %cst_71 = arith.constant 0.000000e+00 : f32
      %209 = vector.broadcast %cst_71 : f32 to vector<1x128xf32>
      %210 = arith.maximumf %40, %209 : vector<1x128xf32>
      %211 = arith.mulf %40, %99 : vector<1x128xf32>
      %212 = arith.subf %210, %211 : vector<1x128xf32>
      %213 = math.absf %40 : vector<1x128xf32>
      %cst_72 = arith.constant 0.000000e+00 : f32
      %214 = vector.broadcast %cst_72 : f32 to vector<1x128xf32>
      %215 = arith.subf %214, %213 : vector<1x128xf32>
      %216 = math.exp %215 : vector<1x128xf32>
      %cst_73 = arith.constant 1.000000e+00 : f32
      %217 = vector.broadcast %cst_73 : f32 to vector<1x128xf32>
      %218 = arith.addf %217, %216 : vector<1x128xf32>
      %219 = math.log %218 : vector<1x128xf32>
      %220 = arith.addf %212, %219 : vector<1x128xf32>
      %221 = arith.mulf %220, %41 : vector<1x128xf32>
      %222 = vector.shape_cast %221 : vector<1x128xf32> to vector<1x1x128xf32>
      %cst_74 = arith.constant dense<0.000000e+00> : vector<1xf32>
      %223 = vector.multi_reduction <add>, %222, %cst_74 [1, 2] : vector<1x1x128xf32> to vector<1xf32>
      %224 = vector.shape_cast %223 : vector<1xf32> to vector<1x1x1xf32>
      %225 = vector.extract %224[0, 0, 0] : f32 from vector<1x1x1xf32>
      %226 = vector.broadcast %225 : f32 to vector<1x1xf32>
      %c0_75 = arith.constant 0 : index
      %c0_76 = arith.constant 0 : index
      %227 = vector.load %arg4[%c0_75, %c0_76] : memref<8x128xf32, #tpu.memory_space<vmem>>, vector<8x128xf32>
      %c0_77 = arith.constant 0 : index
      %c0_78 = arith.constant 0 : index
      %228 = vector.load %arg5[%c0_77, %c0_78] : memref<1x128xi32, #tpu.memory_space<vmem>>, vector<1x128xi32>
      %cst_79 = arith.constant dense<0xFF800000> : vector<128xf32>
      %229 = vector.multi_reduction <maximumf>, %227, %cst_79 [0] : vector<8x128xf32> to vector<128xf32>
      %230 = vector.shape_cast %229 : vector<128xf32> to vector<1x128xf32>
      %231 = vector.broadcast %230 : vector<1x128xf32> to vector<8x128xf32>
      %232 = arith.subf %227, %231 : vector<8x128xf32>
      %233 = math.exp %232 : vector<8x128xf32>
      %cst_80 = arith.constant dense<0.000000e+00> : vector<128xf32>
      %234 = vector.multi_reduction <add>, %233, %cst_80 [0] : vector<8x128xf32> to vector<128xf32>
      %235 = vector.shape_cast %234 : vector<128xf32> to vector<1x128xf32>
      %236 = math.log %235 : vector<1x128xf32>
      %237 = arith.addf %230, %236 : vector<1x128xf32>
      %238 = tpu.iota {dimensions = array<i32: 0>} : vector<8x128xi32>
      %239 = vector.broadcast %228 : vector<1x128xi32> to vector<8x128xi32>
      %240 = arith.cmpi eq, %238, %239 : vector<8x128xi32>
      %cst_81 = arith.constant 0.000000e+00 : f32
      %241 = vector.broadcast %cst_81 : f32 to vector<8x128xf32>
      %242 = arith.select %240, %227, %241 : vector<8x128xi1>, vector<8x128xf32>
      %cst_82 = arith.constant dense<0.000000e+00> : vector<128xf32>
      %243 = vector.multi_reduction <add>, %242, %cst_82 [0] : vector<8x128xf32> to vector<128xf32>
      %244 = vector.shape_cast %243 : vector<128xf32> to vector<1x128xf32>
      %245 = arith.subf %237, %244 : vector<1x128xf32>
      %246 = arith.mulf %245, %41 : vector<1x128xf32>
      %247 = vector.shape_cast %246 : vector<1x128xf32> to vector<1x1x128xf32>
      %cst_83 = arith.constant dense<0.000000e+00> : vector<1xf32>
      %248 = vector.multi_reduction <add>, %247, %cst_83 [1, 2] : vector<1x1x128xf32> to vector<1xf32>
      %249 = vector.shape_cast %248 : vector<1xf32> to vector<1x1x1xf32>
      %250 = vector.extract %249[0, 0, 0] : f32 from vector<1x1x1xf32>
      %251 = vector.broadcast %250 : f32 to vector<1x1xf32>
      %252 = arith.truncf %40 : vector<1x128xf32> to vector<1x128xbf16>
      %253 = arith.extf %252 : vector<1x128xbf16> to vector<1x128xf32>
      %cst_84 = arith.constant 0.000000e+00 : f32
      %254 = vector.broadcast %cst_84 : f32 to vector<1x128xf32>
      %255 = arith.maximumf %253, %254 : vector<1x128xf32>
      %256 = math.absf %253 : vector<1x128xf32>
      %cst_85 = arith.constant 0.000000e+00 : f32
      %257 = vector.broadcast %cst_85 : f32 to vector<1x128xf32>
      %258 = arith.subf %257, %256 : vector<1x128xf32>
      %259 = math.exp %258 : vector<1x128xf32>
      %cst_86 = arith.constant 1.000000e+00 : f32
      %260 = vector.broadcast %cst_86 : f32 to vector<1x128xf32>
      %261 = arith.addf %260, %259 : vector<1x128xf32>
      %262 = math.log %261 : vector<1x128xf32>
      %263 = arith.addf %255, %262 : vector<1x128xf32>
      %264 = arith.mulf %263, %41 : vector<1x128xf32>
      %265 = vector.shape_cast %264 : vector<1x128xf32> to vector<1x1x128xf32>
      %cst_87 = arith.constant dense<0.000000e+00> : vector<1xf32>
      %266 = vector.multi_reduction <add>, %265, %cst_87 [1, 2] : vector<1x1x128xf32> to vector<1xf32>
      %267 = vector.shape_cast %266 : vector<1xf32> to vector<1x1x1xf32>
      %268 = vector.extract %267[0, 0, 0] : f32 from vector<1x1x1xf32>
      %269 = vector.broadcast %268 : f32 to vector<1x1xf32>
      %270 = tpu.iota {dimensions = array<i32: 1>} : vector<1x128xi32>
      %c0_i32_88 = arith.constant 0 : i32
      %271 = vector.broadcast %c0_i32_88 : i32 to vector<1x128xi32>
      %272 = arith.cmpi eq, %270, %271 : vector<1x128xi32>
      %cst_89 = arith.constant 0.000000e+00 : f32
      %273 = vector.broadcast %cst_89 : f32 to vector<1x1xf32>
      %274 = arith.subf %273, %269 : vector<1x1xf32>
      %cst_90 = arith.constant 0.000000e+00 : f32
      %275 = vector.shape_cast %274 : vector<1x1xf32> to vector<1x1xf32>
      %276 = vector.broadcast %275 : vector<1x1xf32> to vector<1x128xf32>
      %277 = vector.broadcast %cst_90 : f32 to vector<1x128xf32>
      %278 = arith.select %272, %276, %277 : vector<1x128xi1>, vector<1x128xf32>
      %c1_i32 = arith.constant 1 : i32
      %279 = vector.broadcast %c1_i32 : i32 to vector<1x128xi32>
      %280 = arith.cmpi eq, %270, %279 : vector<1x128xi32>
      %cst_91 = arith.constant 0.000000e+00 : f32
      %281 = vector.shape_cast %208 : vector<1x1xf32> to vector<1x1xf32>
      %282 = vector.broadcast %281 : vector<1x1xf32> to vector<1x128xf32>
      %283 = vector.broadcast %cst_91 : f32 to vector<1x128xf32>
      %284 = arith.select %280, %282, %283 : vector<1x128xi1>, vector<1x128xf32>
      %285 = arith.addf %278, %284 : vector<1x128xf32>
      %c2_i32 = arith.constant 2 : i32
      %286 = vector.broadcast %c2_i32 : i32 to vector<1x128xi32>
      %287 = arith.cmpi eq, %270, %286 : vector<1x128xi32>
      %cst_92 = arith.constant 0.000000e+00 : f32
      %288 = vector.shape_cast %226 : vector<1x1xf32> to vector<1x1xf32>
      %289 = vector.broadcast %288 : vector<1x1xf32> to vector<1x128xf32>
      %290 = vector.broadcast %cst_92 : f32 to vector<1x128xf32>
      %291 = arith.select %287, %289, %290 : vector<1x128xi1>, vector<1x128xf32>
      %292 = arith.addf %285, %291 : vector<1x128xf32>
      %c3_i32 = arith.constant 3 : i32
      %293 = vector.broadcast %c3_i32 : i32 to vector<1x128xi32>
      %294 = arith.cmpi eq, %270, %293 : vector<1x128xi32>
      %cst_93 = arith.constant 0.000000e+00 : f32
      %295 = vector.shape_cast %251 : vector<1x1xf32> to vector<1x1xf32>
      %296 = vector.broadcast %295 : vector<1x1xf32> to vector<1x128xf32>
      %297 = vector.broadcast %cst_93 : f32 to vector<1x128xf32>
      %298 = arith.select %294, %296, %297 : vector<1x128xi1>, vector<1x128xf32>
      %299 = arith.addf %292, %298 : vector<1x128xf32>
      %c0_94 = arith.constant 0 : index
      %c0_95 = arith.constant 0 : index
      %300 = vector.load %arg8[%c0_94, %c0_95] : memref<1x128xf32, #tpu.memory_space<vmem>>, vector<1x128xf32>
      tpu.vector_store %arg8[%c0_94, %c0_95], %299 {strides = array<i32>} : memref<1x128xf32, #tpu.memory_space<vmem>>, vector<1x128xf32>,
    } else {
    }
    %c0_i32_12 = arith.constant 0 : i32
    %25 = arith.cmpi eq, %arg1, %c0_i32_12 : i32
    %26 = arith.extui %25 : i1 to i32
    %c0_i32_13 = arith.constant 0 : i32
    %27 = arith.cmpi ne, %26, %c0_i32_13 : i32
    scf.if %27 {
      %c0_14 = arith.constant 0 : index
      %c0_15 = arith.constant 0 : index
      %28 = vector.load %arg7[%c0_14, %c0_15] : memref<1x128xf32, #tpu.memory_space<vmem>>, vector<1x128xf32>
      %29 = vector.shape_cast %28 : vector<1x128xf32> to vector<1x1x128xf32>
      %cst_16 = arith.constant dense<0.000000e+00> : vector<1xf32>
      %30 = vector.multi_reduction <add>, %29, %cst_16 [1, 2] : vector<1x1x128xf32> to vector<1xf32>
      %31 = vector.shape_cast %30 : vector<1xf32> to vector<1x1x1xf32>
      %32 = vector.extract %31[0, 0, 0] : f32 from vector<1x1x1xf32>
      %33 = vector.broadcast %32 : f32 to vector<1x1xf32>
      %34 = tpu.iota {dimensions = array<i32: 1>} : vector<1x128xi32>
      %c0_17 = arith.constant 0 : index
      %c0_18 = arith.constant 0 : index
      %35 = vector.load %arg8[%c0_17, %c0_18] : memref<1x128xf32, #tpu.memory_space<vmem>>, vector<1x128xf32>
      %c0_i32_19 = arith.constant 0 : i32
      %36 = vector.broadcast %c0_i32_19 : i32 to vector<1x128xi32>
      %37 = arith.cmpi eq, %34, %36 : vector<1x128xi32>
      %cst_20 = arith.constant 0.000000e+00 : f32
      %38 = vector.shape_cast %33 : vector<1x1xf32> to vector<1x1xf32>
      %39 = vector.broadcast %38 : vector<1x1xf32> to vector<1x128xf32>
      %40 = vector.broadcast %cst_20 : f32 to vector<1x128xf32>
      %41 = arith.select %37, %39, %40 : vector<1x128xi1>, vector<1x128xf32>
      %42 = arith.addf %35, %41 : vector<1x128xf32>
      %c0_21 = arith.constant 0 : index
      %c0_22 = arith.constant 0 : index
      %43 = vector.load %arg6[%c0_21, %c0_22] : memref<1x128xf32, #tpu.memory_space<vmem>>, vector<1x128xf32>
      tpu.vector_store %arg6[%c0_21, %c0_22], %42 {strides = array<i32>} : memref<1x128xf32, #tpu.memory_space<vmem>>, vector<1x128xf32>,
    } else {
    }
    return
  }
  func.func @transform_0(%arg0: i32, %arg1: i32) -> (i32, i32) {
    %c1_i32 = arith.constant 1 : i32
    %0 = arith.muli %arg0, %c1_i32 : i32
    %1 = arith.addi %0, %arg1 : i32
    %c0_i32 = arith.constant 0 : i32
    %c0_i32_0 = arith.constant 0 : i32
    return %1, %c0_i32 : i32, i32
  }
  func.func @transform_1(%arg0: i32, %arg1: i32) -> (i32, i32) {
    %c0_i32 = arith.constant 0 : i32
    %c0_i32_0 = arith.constant 0 : i32
    %c0_i32_1 = arith.constant 0 : i32
    return %c0_i32, %c0_i32_0 : i32, i32
  }
  func.func @transform_2(%arg0: i32, %arg1: i32) -> (i32, i32) {
    %c0_i32 = arith.constant 0 : i32
    %c0_i32_0 = arith.constant 0 : i32
    %c0_i32_1 = arith.constant 0 : i32
    return %c0_i32, %c0_i32_0 : i32, i32
  }
  func.func @transform_3(%arg0: i32, %arg1: i32) -> (i32, i32) {
    %c0_i32 = arith.constant 0 : i32
    %c0_i32_0 = arith.constant 0 : i32
    %c0_i32_1 = arith.constant 0 : i32
    return %c0_i32, %c0_i32_0 : i32, i32
  }
  func.func @transform_4(%arg0: i32, %arg1: i32) -> (i32, i32) {
    %c0_i32 = arith.constant 0 : i32
    %c0_i32_0 = arith.constant 0 : i32
    return %c0_i32, %arg0 : i32, i32
  }
}

module attributes {stable_mosaic.version = 11 : i64} {
  func.func @_seg_kernel(%arg0: i32, %arg1: i32, %arg2: memref<1x4x256xf32, #tpu.memory_space<vmem>>, %arg3: memref<1x1x256xi32, #tpu.memory_space<vmem>>, %arg4: memref<1x128xf32, #tpu.memory_space<vmem>>, %arg5: memref<1x256xf32, #tpu.memory_space<vmem>>, %arg6: memref<1x256xf32, #tpu.memory_space<vmem>>) attributes {dimension_semantics = [#tpu.dimension_semantics<parallel>, #tpu.dimension_semantics<arbitrary>], iteration_bounds = array<i64: 2, 1>, scalar_prefetch = 0 : i64, scratch_operands = 2 : i64, tpu.core_type = #tpu.core_type<tc>, window_params = [{transform_indices = @transform_0, window_bounds = array<i64: 1, 4, 256>}, {transform_indices = @transform_1, window_bounds = array<i64: 1, 1, 256>}, {transform_indices = @transform_2, window_bounds = array<i64: 1, 128>}]} {
    %c0_i32 = arith.constant 0 : i32
    %0 = arith.cmpi eq, %arg1, %c0_i32 : i32
    %1 = arith.extui %0 : i1 to i32
    %c0_i32_0 = arith.constant 0 : i32
    %2 = arith.cmpi ne, %1, %c0_i32_0 : i32
    scf.if %2 {
      %cst_20 = arith.constant 0.000000e+00 : f32
      %38 = vector.broadcast %cst_20 : f32 to vector<1x256xf32>
      %c0_21 = arith.constant 0 : index
      %c0_22 = arith.constant 0 : index
      %39 = vector.load %arg5[%c0_21, %c0_22] : memref<1x256xf32, #tpu.memory_space<vmem>>, vector<1x256xf32>
      tpu.vector_store %arg5[%c0_21, %c0_22], %38 {strides = array<i32>} : memref<1x256xf32, #tpu.memory_space<vmem>>, vector<1x256xf32>,
      %cst_23 = arith.constant 0.000000e+00 : f32
      %40 = vector.broadcast %cst_23 : f32 to vector<1x256xf32>
      %c0_24 = arith.constant 0 : index
      %c0_25 = arith.constant 0 : index
      %41 = vector.load %arg6[%c0_24, %c0_25] : memref<1x256xf32, #tpu.memory_space<vmem>>, vector<1x256xf32>
      tpu.vector_store %arg6[%c0_24, %c0_25], %40 {strides = array<i32>} : memref<1x256xf32, #tpu.memory_space<vmem>>, vector<1x256xf32>,
    } else {
    }
    %c0 = arith.constant 0 : index
    %c0_1 = arith.constant 0 : index
    %c0_2 = arith.constant 0 : index
    %3 = vector.load %arg2[%c0, %c0_1, %c0_2] : memref<1x4x256xf32, #tpu.memory_space<vmem>>, vector<1x4x256xf32>
    %4 = vector.shape_cast %3 : vector<1x4x256xf32> to vector<4x256xf32>
    %c0_3 = arith.constant 0 : index
    %c0_4 = arith.constant 0 : index
    %c0_5 = arith.constant 0 : index
    %5 = vector.load %arg3[%c0_3, %c0_4, %c0_5] : memref<1x1x256xi32, #tpu.memory_space<vmem>>, vector<1x1x256xi32>
    %6 = vector.shape_cast %5 : vector<1x1x256xi32> to vector<1x256xi32>
    %c0_i32_6 = arith.constant 0 : i32
    %7 = vector.broadcast %c0_i32_6 : i32 to vector<1x256xi32>
    %8 = arith.cmpi sge, %6, %7 : vector<1x256xi32>
    %9 = arith.extui %8 : vector<1x256xi1> to vector<1x256xi32>
    %10 = arith.sitofp %9 : vector<1x256xi32> to vector<1x256xf32>
    %cst = arith.constant dense<0xFF800000> : vector<256xf32>
    %11 = vector.multi_reduction <maximumf>, %4, %cst [0] : vector<4x256xf32> to vector<256xf32>
    %12 = vector.shape_cast %11 : vector<256xf32> to vector<1x256xf32>
    %13 = vector.broadcast %12 : vector<1x256xf32> to vector<4x256xf32>
    %14 = arith.subf %4, %13 : vector<4x256xf32>
    %15 = math.exp %14 : vector<4x256xf32>
    %cst_7 = arith.constant dense<0.000000e+00> : vector<256xf32>
    %16 = vector.multi_reduction <add>, %15, %cst_7 [0] : vector<4x256xf32> to vector<256xf32>
    %17 = vector.shape_cast %16 : vector<256xf32> to vector<1x256xf32>
    %18 = math.log %17 : vector<1x256xf32>
    %19 = arith.addf %12, %18 : vector<1x256xf32>
    %20 = tpu.iota {dimensions = array<i32: 0>} : vector<4x256xi32>
    %21 = vector.broadcast %6 : vector<1x256xi32> to vector<4x256xi32>
    %22 = arith.cmpi eq, %20, %21 : vector<4x256xi32>
    %cst_8 = arith.constant 0.000000e+00 : f32
    %23 = vector.broadcast %cst_8 : f32 to vector<4x256xf32>
    %24 = arith.select %22, %4, %23 : vector<4x256xi1>, vector<4x256xf32>
    %cst_9 = arith.constant dense<0.000000e+00> : vector<256xf32>
    %25 = vector.multi_reduction <add>, %24, %cst_9 [0] : vector<4x256xf32> to vector<256xf32>
    %26 = vector.shape_cast %25 : vector<256xf32> to vector<1x256xf32>
    %c0_10 = arith.constant 0 : index
    %c0_11 = arith.constant 0 : index
    %27 = vector.load %arg5[%c0_10, %c0_11] : memref<1x256xf32, #tpu.memory_space<vmem>>, vector<1x256xf32>
    %28 = arith.subf %19, %26 : vector<1x256xf32>
    %29 = arith.mulf %28, %10 : vector<1x256xf32>
    %30 = arith.addf %27, %29 : vector<1x256xf32>
    %c0_12 = arith.constant 0 : index
    %c0_13 = arith.constant 0 : index
    %31 = vector.load %arg5[%c0_12, %c0_13] : memref<1x256xf32, #tpu.memory_space<vmem>>, vector<1x256xf32>
    tpu.vector_store %arg5[%c0_12, %c0_13], %30 {strides = array<i32>} : memref<1x256xf32, #tpu.memory_space<vmem>>, vector<1x256xf32>,
    %c0_14 = arith.constant 0 : index
    %c0_15 = arith.constant 0 : index
    %32 = vector.load %arg6[%c0_14, %c0_15] : memref<1x256xf32, #tpu.memory_space<vmem>>, vector<1x256xf32>
    %33 = arith.addf %32, %10 : vector<1x256xf32>
    %c0_16 = arith.constant 0 : index
    %c0_17 = arith.constant 0 : index
    %34 = vector.load %arg6[%c0_16, %c0_17] : memref<1x256xf32, #tpu.memory_space<vmem>>, vector<1x256xf32>
    tpu.vector_store %arg6[%c0_16, %c0_17], %33 {strides = array<i32>} : memref<1x256xf32, #tpu.memory_space<vmem>>, vector<1x256xf32>,
    %c0_i32_18 = arith.constant 0 : i32
    %35 = arith.cmpi eq, %arg1, %c0_i32_18 : i32
    %36 = arith.extui %35 : i1 to i32
    %c0_i32_19 = arith.constant 0 : i32
    %37 = arith.cmpi ne, %36, %c0_i32_19 : i32
    scf.if %37 {
      %c0_20 = arith.constant 0 : index
      %c0_21 = arith.constant 0 : index
      %38 = vector.load %arg5[%c0_20, %c0_21] : memref<1x256xf32, #tpu.memory_space<vmem>>, vector<1x256xf32>
      %39 = vector.shape_cast %38 : vector<1x256xf32> to vector<1x1x256xf32>
      %cst_22 = arith.constant dense<0.000000e+00> : vector<1xf32>
      %40 = vector.multi_reduction <add>, %39, %cst_22 [1, 2] : vector<1x1x256xf32> to vector<1xf32>
      %41 = vector.shape_cast %40 : vector<1xf32> to vector<1x1x1xf32>
      %42 = vector.extract %41[0, 0, 0] : f32 from vector<1x1x1xf32>
      %43 = vector.broadcast %42 : f32 to vector<1x1xf32>
      %c0_23 = arith.constant 0 : index
      %c0_24 = arith.constant 0 : index
      %44 = vector.load %arg6[%c0_23, %c0_24] : memref<1x256xf32, #tpu.memory_space<vmem>>, vector<1x256xf32>
      %45 = vector.shape_cast %44 : vector<1x256xf32> to vector<1x1x256xf32>
      %cst_25 = arith.constant dense<0.000000e+00> : vector<1xf32>
      %46 = vector.multi_reduction <add>, %45, %cst_25 [1, 2] : vector<1x1x256xf32> to vector<1xf32>
      %47 = vector.shape_cast %46 : vector<1xf32> to vector<1x1x1xf32>
      %48 = vector.extract %47[0, 0, 0] : f32 from vector<1x1x1xf32>
      %49 = vector.broadcast %48 : f32 to vector<1x1xf32>
      %50 = tpu.iota {dimensions = array<i32: 1>} : vector<1x128xi32>
      %c0_i32_26 = arith.constant 0 : i32
      %51 = vector.broadcast %c0_i32_26 : i32 to vector<1x128xi32>
      %52 = arith.cmpi eq, %50, %51 : vector<1x128xi32>
      %cst_27 = arith.constant 0.000000e+00 : f32
      %53 = vector.shape_cast %43 : vector<1x1xf32> to vector<1x1xf32>
      %54 = vector.broadcast %53 : vector<1x1xf32> to vector<1x128xf32>
      %55 = vector.broadcast %cst_27 : f32 to vector<1x128xf32>
      %56 = arith.select %52, %54, %55 : vector<1x128xi1>, vector<1x128xf32>
      %c1_i32 = arith.constant 1 : i32
      %57 = vector.broadcast %c1_i32 : i32 to vector<1x128xi32>
      %58 = arith.cmpi eq, %50, %57 : vector<1x128xi32>
      %cst_28 = arith.constant 0.000000e+00 : f32
      %59 = vector.shape_cast %49 : vector<1x1xf32> to vector<1x1xf32>
      %60 = vector.broadcast %59 : vector<1x1xf32> to vector<1x128xf32>
      %61 = vector.broadcast %cst_28 : f32 to vector<1x128xf32>
      %62 = arith.select %58, %60, %61 : vector<1x128xi1>, vector<1x128xf32>
      %63 = arith.addf %56, %62 : vector<1x128xf32>
      %c0_29 = arith.constant 0 : index
      %c0_30 = arith.constant 0 : index
      %64 = vector.load %arg4[%c0_29, %c0_30] : memref<1x128xf32, #tpu.memory_space<vmem>>, vector<1x128xf32>
      tpu.vector_store %arg4[%c0_29, %c0_30], %63 {strides = array<i32>} : memref<1x128xf32, #tpu.memory_space<vmem>>, vector<1x128xf32>,
    } else {
    }
    return
  }
  func.func @transform_0(%arg0: i32, %arg1: i32) -> (i32, i32, i32) {
    %c0_i32 = arith.constant 0 : i32
    %c0_i32_0 = arith.constant 0 : i32
    return %arg0, %c0_i32, %arg1 : i32, i32, i32
  }
  func.func @transform_1(%arg0: i32, %arg1: i32) -> (i32, i32, i32) {
    %c0_i32 = arith.constant 0 : i32
    %c0_i32_0 = arith.constant 0 : i32
    return %arg0, %c0_i32, %arg1 : i32, i32, i32
  }
  func.func @transform_2(%arg0: i32, %arg1: i32) -> (i32, i32) {
    %c0_i32 = arith.constant 0 : i32
    %c0_i32_0 = arith.constant 0 : i32
    return %c0_i32, %arg0 : i32, i32
  }
}

</mosaic_0001>

<bundles_post_ra>
// kernel: yolo_loss_v2.3
= control target key start
LH: loop header
LB: loop body
LE: loop exit
PB: predicated region body
PF: predicated region fallthrough
CT: control target
= control target key end

     0   :  { %s563_s9 = smov 0   ;;  %s565_s10 = smov 0   ;;  %s642_s0 = inlined_call_operand.vmem [shape: f32[2,4,256], index: 0, kind: input, shape index: {}]   ;;  %s643_s1 = inlined_call_operand.vmem [shape: s32[2,1,256], index: 1, kind: input, shape index: {}]   ;;  %s644_s2 = inlined_call_operand.vmem [shape: f32[1,256], index: 2, kind: output, shape index: {}]  }
   0x1   :  { %s567_s11 = smov 0  }
   0x2 LB: > { %s24_s12 = sadd.s32 1, %s540_s10  ;;  %p477_p0 = scmp.ge.s32.totalorder %s544_s11, 1  ;;  %s544_s11 = sphi %s567_s11, %s12_s11   ;;  %s540_s10 = sphi %s565_s10, %s648_s10   ;;  %s536_s9 = sphi %s563_s9, %s647_s9  }
   0x3   : > { %p26_p1 = scmp.ge.s32.totalorder %s24_s12, 2  ;;  %p147_p2 = scmp.lt.s32.totalorder %s544_s11, 3 }
   0x5   : > { %s650_s12 = smov (%p26_p1, %s24_s12), 0  ;;  %p148_p3 = pnand %p477_p0, %p147_p2 }
   0x6   : > { %p180_p4 = scmp.lt.s32.totalorder (!%p148_p3), %s536_s9, 1 }
   0x7   : > { %151 = sbr.rel (%p148_p3) target bundleno = 318 (0x13e), region = 28 }
   0xc   : > { %v205_v0 = vlaneseq  ;;  %s652_s9 = smov (!%p180_p4, %s536_s9), 1  ;;  %v546_v2 = vmov 0.0   ;;  %vm219_vm1 = vcmask 1043456   ;;  %vm350_vm5 = vcmask 1040384  }
   0xd   : > { %s484_s13 = sshll.u32 %s652_s9, 3  ;;  %s480_s14 = sshll.u32 %s652_s9, 1 }
   0xe   : > { %vm584_vm0 = vcmp.lt.s32.totalorder %v205_v0, 256  ;;  %s187_s17 = scalar_lea.vmem %s642_s0, %s484_s13  ;;  %s196_s20 = scalar_lea.vmem %s643_s1, %s480_s14  ;;  %v265_v26 = vshrl.u32 %v205_v0, 7 }
   0xf   : > { %209 = vst.msk [vmem:[#allocation2] sm:$0x3] %vm584_vm0, %v546_v2  ;;  %210 = vst.msk [vmem:[#allocation3] sm:$0x3] %vm584_vm0, %v546_v2  ;;  %v211_v3 = vld [vmem:[%s187_s17] sm:$0xff]  ;;  %s200_s25 = scalar_lea.vmem %s644_s2, %s652_s9 }
  0x10   : > { %v212_v4 = vld [vmem:[%s196_s20] sm:$0x3]  ;;  %v217_v5 = vcombine.high %v211_v3, %v211_v3  ;;  %v220_v6 = vsel %vm219_vm1, %v211_v3, -inf  ;;  %v608_v27 = vsub.s32 0, %v265_v26  ;;  %v610_v28 = vsub.s32 1, %v265_v26 }
  0x11   : > { %vm213_vm2 = vcmp.ge.s32.totalorder %v212_v4, 0  ;;  %v221_v7 = vrot.slane %v220_v6, 4 }
  0x12   : > { %v227_v8 = vsel %vm219_vm1, %v217_v5, -inf  ;;  %v602_v9 = vsel %vm213_vm2, 1.0, %v546_v2  ;;  %v269_v29 = vrot.slane %v212_v4, %v608_v27  ;;  %v273_v30 = vrot.slane %v212_v4, %v610_v28 }
  0x13   : > { %v222_v10 = vmax.f32 %v220_v6, %v221_v7  ;;  %v228_v11 = vrot.slane %v227_v8, 4  ;;  %v547_v2 = vmov 1966171168  }
  0x14   : > { %vm274_vm3 = vcmp.eq.s32.totalorder %v265_v26, %v269_v29  ;;  %vm275_vm4 = vcmp.eq.s32.totalorder %v265_v26, %v273_v30 }
  0x15   : > { %v223_v14 = vrot.slane %v222_v10, 2  ;;  %v229_v15 = vmax.f32 %v227_v8, %v228_v11  ;;  %v276_v35 = vsel %vm274_vm3, %v211_v3, 0.0  ;;  %v277_v39 = vsel %vm275_vm4, %v217_v5, 0.0 }
  0x16   : > { %v332_v12 = vld [vmem:[#allocation3] sm:$0x3]  ;;  %v278_v40 = vsel %vm219_vm1, %v276_v35, 0.0  ;;  %v285_v43 = vsel %vm219_vm1, %v277_v39, 0.0  ;;  %v299_v8 = vrot.slane %v602_v9, %v608_v27 }
  0x17   : > { %v333_v13 = vadd.f32 %v602_v9, %v332_v12  ;;  %v224_v16 = vmax.f32 %v222_v10, %v223_v14  ;;  %v230_v17 = vrot.slane %v229_v15, 2  ;;  %v279_v46 = vrot.slane %v278_v40, 4 }
  0x18   : > { %v286_v49 = vrot.slane %v285_v43, 4  ;;  %v303_v12 = vrot.slane %v602_v9, %v610_v28 }
  0x19   : > { %334 = vst.msk [vmem:[#allocation3] sm:$0x3] %vm584_vm0, %v333_v13  ;;  %v225_v18 = vrot.slane %v224_v16, 1  ;;  %v231_v19 = vmax.f32 %v229_v15, %v230_v17  ;;  %v280_v52 = vadd.f32 %v279_v46, %v278_v40 }
  0x1a   : > { %v287_v54 = vadd.f32 %v286_v49, %v285_v43 }
  0x1b   : > { %v226_v20 = vmax.f32 %v224_v16, %v225_v18  ;;  %v232_v21 = vrot.slane %v231_v19, 1  ;;  %v281_v55 = vrot.slane %v280_v52, 2 }
  0x1c   : > { %v288_v56 = vrot.slane %v287_v54, 2 }
  0x1d   : > { %v233_v22 = vmax.f32 %v231_v19, %v232_v21  ;;  %v282_v57 = vadd.f32 %v281_v55, %v280_v52  ;;  %v292_v21 = vld [vmem:[#allocation2] sm:$0x3] }
  0x1e   : > { %v289_v58 = vadd.f32 %v288_v56, %v287_v54 }
  0x1f   : > { %v236_v23 = vcombine.low %v226_v20, %v233_v22  ;;  %v283_v59 = vrot.slane %v282_v57, 1 }
  0x20   : > { %v290_v60 = vrot.slane %v289_v58, 1 }
  0x21   : > { %v238_v24 = vsub.f32 %v211_v3, %v236_v23  ;;  %v284_v63 = vadd.f32 %v283_v59, %v282_v57  ;;  %v312_v3 = vunpack.c.l.s4 %v547_v2 }
  0x22   : > { %v291_v7 = vadd.f32 %v290_v60, %v289_v58 }
  0x23   : > { %v239_v25 = vmul.f32 1.442695, %v238_v24  ;;  %v313_v13 = vunpack.c.0.s8 %v312_v3 }
  0x25   : > { %516 = vpow2.f32 %v239_v25  ;;  %v316_v17 = vsub.s32 %v313_v13, %v265_v26 }
  0x32   : > { %v517_v31 = vpop.eup %516 }
  0x33   : > { %v242_v32 = vcombine.high %v517_v31, %v517_v31  ;;  %v244_v33 = vsel %vm219_vm1, %v517_v31, 0.0 }
  0x34   : > { %v245_v34 = vrot.slane %v244_v33, 4 }
  0x35   : > { %v251_v36 = vsel %vm219_vm1, %v242_v32, 0.0 }
  0x36   : > { %v246_v37 = vadd.f32 %v245_v34, %v244_v33  ;;  %v252_v38 = vrot.slane %v251_v36, 4 }
  0x38   : > { %v247_v41 = vrot.slane %v246_v37, 2  ;;  %v253_v42 = vadd.f32 %v252_v38, %v251_v36 }
  0x3a   : > { %v248_v44 = vadd.f32 %v247_v41, %v246_v37  ;;  %v254_v45 = vrot.slane %v253_v42, 2 }
  0x3c   : > { %v249_v47 = vrot.slane %v248_v44, 1  ;;  %v255_v48 = vadd.f32 %v254_v45, %v253_v42 }
  0x3e   : > { %v250_v50 = vadd.f32 %v249_v47, %v248_v44  ;;  %v256_v51 = vrot.slane %v255_v48, 1  ;;  %v388_v47 = vand.u32 127, %v205_v0 }
  0x40   : > { %v257_v53 = vadd.f32 %v256_v51, %v255_v48  ;;  %518 = vlog2.f32 %v250_v50  ;;  %vm389_vm6 = vcmp.eq.s32.totalorder %v388_v47, 0  ;;  %vm392_vm7 = vcmp.eq.s32.totalorder %v388_v47, 1 }
  0x42   : > { %520 = vlog2.f32 %v257_v53 }
  0x4d   : > { %v519_v61 = vpop.eup %518 }
  0x4e   : > { %v259_v62 = vmul.f32 0.6931472, %v519_v61 }
  0x4f   : > { %v521_v4 = vpop.eup %520 }
  0x50   : > { %v261_v5 = vmul.f32 0.6931472, %v521_v4  ;;  %v262_v6 = vadd.f32 %v259_v62, %v226_v20  ;;  %v363_v20 = vld [vmem:[#allocation3] sm:$0x3] }
  0x51   : > { %v372_v25 = vrot.slane %v363_v20, %v610_v28 }
  0x52   : > { %v263_v10 = vadd.f32 %v261_v5, %v233_v22  ;;  %v293_v11 = vsub.f32 %v262_v6, %v284_v63  ;;  %v368_v22 = vrot.slane %v363_v20, %v608_v27 }
  0x53   : > { %v376_v33 = vsel %vm350_vm5, %v372_v25, 0.0 }
  0x54   : > { %v294_v14 = vsub.f32 %v263_v10, %v291_v7  ;;  %v306_v15 = vmul.f32 %v299_v8, %v293_v11  ;;  %v375_v32 = vsel %vm350_vm5, %v368_v22, 0.0 }
  0x55   : > { %v377_v35 = vadd.f32 %v376_v33, %v375_v32 }
  0x56   : > { %v307_v16 = vmul.f32 %v303_v12, %v294_v14 }
  0x58   : > { %v310_v18 = vcombine.low %v306_v15, %v307_v16 }
  0x5a   : > { %v317_v19 = vrot.slane %v310_v18, %v316_v17 }
  0x5c   : > { %v324_v23 = vrot.slane %v317_v19, %v316_v17 }
  0x5e   : > { %v326_v24 = vadd.f32 %v324_v23, %v292_v21 }
  0x60   : > { %331 = vst.msk [vmem:[#allocation2] sm:$0x3] %vm584_vm0, %v326_v24 }
  0x67   : > { %v338_v29 = vld [vmem:[#allocation2] sm:$0x3] }
  0x68   : > { %v343_v9 = vrot.slane %v338_v29, %v608_v27  ;;  %v347_v30 = vrot.slane %v338_v29, %v610_v28 }
  0x6a   : > { %v351_v26 = vsel %vm350_vm5, %v343_v9, 0.0  ;;  %v352_v31 = vsel %vm350_vm5, %v347_v30, 0.0 }
  0x6b   : > { %v353_v34 = vadd.f32 %v352_v31, %v351_v26 }
  0x6d   : > { %354 = vadd.xlane.f32.xlu0 %v353_v34 }
  0x71   : > { %378 = vadd.xlane.f32.xlu0 %v377_v35 }
  0xf6   : > { %v355_v1 = vpop.xlane.xlu0 %354 }
  0xf7   : > { %v356_v36 = vrot.slane %v355_v1, 4 }
  0xf9   : > { %v357_v37 = vadd.f32 %v356_v36, %v355_v1 }
  0xfa   : > { %v379_v38 = vpop.xlane.xlu0 %378 }
  0xfb   : > { %v358_v39 = vrot.slane %v357_v37, 2  ;;  %v380_v40 = vrot.slane %v379_v38, 4 }
  0xfd   : > { %v381_v41 = vadd.f32 %v380_v40, %v379_v38  ;;  %v359_v42 = vadd.f32 %v358_v39, %v357_v37 }
  0xff   : > { %v382_v43 = vrot.slane %v381_v41, 2  ;;  %v360_v27 = vrot.slane %v359_v42, 1 }
 0x101   : > { %v383_v28 = vadd.f32 %v382_v43, %v381_v41  ;;  %v361_v44 = vadd.f32 %v360_v27, %v359_v42 }
 0x103   : > { %485 = vpush %v361_v44  ;;  %v384_v45 = vrot.slane %v383_v28, 1 }
 0x105   : > { %v385_v46 = vadd.f32 %v384_v45, %v383_v28 }
 0x107   : > { %487 = vpush %v385_v46 }
 0x134   : > { %s486_s21 = spop %485 }
 0x135   : > { %v390_v48 = vstv %s486_s21 }
 0x136   : > { %v391_v50 = vsel %vm389_vm6, %v390_v48, 0.0 }
 0x138   : > { %s488_s22 = spop %487 }
 0x139   : > { %v393_v49 = vstv %s488_s22 }
 0x13a   : > { %v394_v51 = vsel %vm392_vm7, %v393_v49, 0.0 }
 0x13b   : > { %v395_v52 = vadd.f32 %v394_v51, %v391_v50 }
 0x13d   : > { %396 = vst [vmem:[%s200_s25] sm:$0x1] %v395_v52 }
 0x13e PF: > { %s12_s11 = sadd.s32 1, %s544_s11   ;;  %s647_s9 = smov %s540_s10 }
 0x13f   : > { %p9_p5 = scmp.ge.s32.totalorder %s12_s11, 4   ;;  %s648_s10 = smov %s650_s12 }
 0x141   :  { %11 = sbr.rel (!%p9_p5) target bundleno = 2 (0x2), region = 69 }

// kernel: yolo_loss_v2.4
= control target key start
LH: loop header
LB: loop body
LE: loop exit
PB: predicated region body
PF: predicated region fallthrough
CT: control target
= control target key end

     0   :  { %v83_v2 = vlaneseq  ;;  %v505_v43 = vmov 0.0   ;;  %vm283_vm3 = vcmask 1040384   ;;  %s724_s0 = inlined_call_operand.vmem [shape: f32[16,128], index: 0, kind: input, shape index: {}]   ;;  %s725_s1 = inlined_call_operand.vmem [shape: f32[8,128], index: 1, kind: input, shape index: {}]   ;;  %s726_s2 = inlined_call_operand.vmem [shape: s32[1,128], index: 2, kind: input, shape index: {}]   ;;  %s727_s3 = inlined_call_operand.vmem [shape: bf16[384], index: 3, kind: input, shape index: {}]   ;;  %s728_s4 = inlined_call_operand.<no memory space> [shape: bf16[], index: 4, kind: input, shape index: {}]   ;;  %s729_s5 = inlined_call_operand.vmem [shape: f32[1,128], index: 5, kind: output, shape index: {}]  }
   0x1   :  { %v10_v0 = vstv %s728_s4  ;;  %v542_v3 = vld [vmem:[%s725_s1] sm:$0xff]  ;;  %v551_v6 = vld [vmem:[%s724_s0 + $0xc] sm:$0x1]  ;;  %v581_v33 = vld [vmem:[%s724_s0 + $0x9] sm:$0x1] }
   0x2   :  { %v11_v1 = vunpack.i.l.bf16 %v10_v0  ;;  %v318_v4 = vrot.slane %v542_v3, 4  ;;  %v75_v5 = vld [vmem:[%s727_s3] sm:$0x3]  ;;  %vm86_vm0 = vcmp.lt.s32.totalorder %v83_v2, 384  ;;  %v362_v8 = vpack.c.bf16 %v551_v6, %v551_v6  ;;  %v586_v34 = vld [vmem:[%s724_s0 + $0xb] sm:$0x1] }
   0x3   :  { %v76_v7 = vunpack.c.l.bf16 %v75_v5  ;;  %v140_v12 = vld [vmem:[%s724_s0] sm:$0x1]  ;;  %v141_v15 = vld [vmem:[%s724_s0 + $0x1] sm:$0x1]  ;;  %v142_v38 = vld [vmem:[%s724_s0 + $0x2] sm:$0x1]  ;;  %v593_v39 = vadd.f32 %v586_v34, %v581_v33  ;;  %v600_v41 = vsub.f32 %v586_v34, %v581_v33 }
   0x4   :  { %v319_v9 = vmax.f32 %v542_v3, %v318_v4  ;;  %v557_v11 = vunpack.c.l.bf16 %v362_v8  ;;  %v154_v20 = vsub.f32 0.0, %v140_v12  ;;  %v160_v21 = vsub.f32 0.0, %v141_v15  ;;  %v143_v40 = vld [vmem:[%s724_s0 + $0x3] sm:$0x1]  ;;  %101 = vst [vmem:[#allocation2] sm:$0x1] %v505_v43 }
   0x5   :  { %v87_v10 = vsel %vm86_vm0, %v76_v7, %v11_v1  ;;  %v170_v42 = vmul.f32 1.442695, %v142_v38  ;;  %102 = vst [vmem:[#allocation3] sm:$0x1] %v505_v43  ;;  %v173_v44 = vmul.f32 1.442695, %v143_v40 }
   0x6   :  { %v320_v13 = vrot.slane %v319_v9, 2  ;;  %v562_v14 = vpack.c.bf16 %v11_v1, %v87_v10  ;;  %v365_v16 = vand.u32 2147483647, %v557_v11  ;;  %v155_v28 = vmul.f32 1.442695, %v154_v20 }
   0x7   :  { %v161_v29 = vmul.f32 1.442695, %v160_v21  ;;  %v603_v45 = vadd.f32 1e-07, %v600_v41  ;;  %v337_v48 = vshrl.u32 %v83_v2, 7 }
   0x8   :  { %v321_v17 = vmax.f32 %v319_v9, %v320_v13  ;;  %v444_v18 = vunpack.c.l.bf16 %v562_v14  ;;  %v445_v19 = vunpack.c.h.bf16 %v562_v14  ;;  %v366_v25 = vsub.f32 0.0, %v365_v16  ;;  %v436_v51 = vld [vmem:[%s726_s2] ss:$0 sm:$0xff]  ;;  %v613_v60 = vld [vmem:[%s724_s0 + $0x8] sm:$0x1] }
   0x9   :  { %457 = vpow2.f32 %v155_v28  ;;  %vm342_vm1 = vcmp.eq.s32.totalorder %v337_v48, %v436_v51  ;;  %v618_v61 = vld [vmem:[%s724_s0 + $0xa] sm:$0x1]  ;;  %v146_v5 = vld [vmem:[%s724_s0 + $0x6] sm:$0x1]  ;;  %v147_v12 = vld [vmem:[%s724_s0 + $0x7] sm:$0x1] }
   0xa   :  { %v322_v22 = vrot.slane %v321_v17, 1  ;;  %v110_v23 = vand.u32 2147483647, %v444_v18  ;;  %v111_v24 = vand.u32 2147483647, %v445_v19  ;;  %459 = vpow2.f32 %v161_v29 }
   0xb   :  { %v367_v37 = vmul.f32 1.442695, %v366_v25  ;;  %v343_v62 = vsel %vm342_vm1, %v542_v3, 0.0  ;;  %v626_v7 = vsub.f32 %v618_v61, %v613_v60  ;;  %v144_v15 = vld [vmem:[%s724_s0 + $0x4] sm:$0x1]  ;;  %v108_v25 = vmax.f32 %v444_v18, 0.0 }
   0xc   :  { %v574_v26 = vmax.f32 %v321_v17, %v322_v22  ;;  %v112_v27 = vsub.f32 0.0, %v110_v23  ;;  %v113_v30 = vsub.f32 0.0, %v111_v24  ;;  %v344_v10 = vrot.slane %v343_v62, 4  ;;  %v145_v22 = vld [vmem:[%s724_s0 + $0x5] sm:$0x1] }
   0xe   :  { %v324_v31 = vsub.f32 %v542_v3, %v574_v26  ;;  %v114_v32 = vmul.f32 1.442695, %v112_v27  ;;  %v116_v35 = vmul.f32 1.442695, %v113_v30  ;;  %v345_v21 = vadd.f32 %v344_v10, %v343_v62 }
   0xf   :  { %v109_v30 = vmax.f32 %v445_v19, 0.0  ;;  %v364_v62 = vmax.f32 %v557_v11, 0.0  ;;  %v671_v11 = vld [vmem:[%s724_s0 + $0xd] sm:$0x1] }
  0x10   :  { %v325_v36 = vmul.f32 1.442695, %v324_v31  ;;  %461 = vpow2.f32 %v114_v32 }
  0x11   :  { %463 = vpow2.f32 %v116_v35 }
  0x12   :  { %465 = vpow2.f32 %v325_v36 }
  0x13   :  { %467 = vpow2.f32 %v367_v37  ;;  %v346_v37 = vrot.slane %v345_v21, 2 }
  0x14   :  { %469 = vpow2.f32 %v170_v42 }
  0x15   :  { %471 = vpow2.f32 %v173_v44  ;;  %v347_v19 = vadd.f32 %v346_v37, %v345_v21 }
  0x16   :  { %473 = vrcp.f32 %v603_v45  ;;  %v458_v46 = vpop.eup %457 }
  0x17   :  { %v460_v47 = vpop.eup %459  ;;  %v157_v49 = vadd.f32 1.0, %v458_v46 }
  0x18   :  { %v163_v52 = vadd.f32 1.0, %v460_v47 }
  0x19   :  { %475 = vrcp.f32 %v157_v49 }
  0x1a   :  { %477 = vrcp.f32 %v163_v52  ;;  %v196_v52 = vmul.f32 %v600_v41, %v626_v7 }
  0x1d   :  { %v462_v50 = vpop.eup %461 }
  0x1e   :  { %v464_v53 = vpop.eup %463  ;;  %v118_v54 = vadd.f32 1.0, %v462_v50 }
  0x1f   :  { %v466_v55 = vpop.eup %465  ;;  %v119_v56 = vadd.f32 1.0, %v464_v53 }
  0x20   :  { %v327_v57 = vrot.slane %v466_v55, 4  ;;  %479 = vlog2.f32 %v118_v54  ;;  %v468_v58 = vpop.eup %467 }
  0x21   :  { %481 = vlog2.f32 %v119_v56  ;;  %v470_v63 = vpop.eup %469  ;;  %v369_v1 = vadd.f32 1.0, %v468_v58  ;;  %v348_v56 = vrot.slane %v347_v19, 1 }
  0x22   :  { %v328_v59 = vadd.f32 %v466_v55, %v327_v57  ;;  %v472_v4 = vpop.eup %471  ;;  %v172_v13 = vmul.f32 %v470_v63, %v146_v5 }
  0x23   :  { %v474_v8 = vpop.eup %473  ;;  %483 = vlog2.f32 %v369_v1  ;;  %v175_v16 = vmul.f32 %v472_v4, %v147_v12 }
  0x24   :  { %v329_v0 = vrot.slane %v328_v59, 2  ;;  %v635_v17 = vmul.f32 %v474_v8, %v626_v7  ;;  %v176_v28 = vmul.f32 0.5, %v172_v13  ;;  %v349_v8 = vadd.f32 %v348_v56, %v347_v19 }
  0x25   :  { %v179_v32 = vmul.f32 0.5, %v175_v16 }
  0x26   :  { %v330_v9 = vadd.f32 %v329_v0, %v328_v59  ;;  %v476_v23 = vpop.eup %475  ;;  %v234_v35 = vmax.f32 %v635_v17, 1e-07  ;;  %vm233_vm2 = vcmp.gt.f32.partialorder %v635_v17, 1.0 }
  0x27   :  { %v478_v24 = vpop.eup %477  ;;  %v166_v27 = vadd.f32 %v476_v23, %v144_v15  ;;  %v107_v15 = vld [vmem:[#allocation2] sm:$0x1] }
  0x28   :  { %v331_v3 = vrot.slane %v330_v9, 1  ;;  %v168_v31 = vadd.f32 %v478_v24, %v145_v22 }
  0x29   :  { %v167_v40 = vmul.f32 4.0, %v166_v27 }
  0x2a   :  { %v332_v20 = vadd.f32 %v331_v3, %v330_v9  ;;  %v169_v43 = vmul.f32 4.0, %v168_v31 }
  0x2b   :  { %v645_v46 = vsub.f32 %v167_v40, %v176_v28  ;;  %v647_v18 = vadd.f32 %v176_v28, %v167_v40 }
  0x2c   :  { %485 = vlog2.f32 %v332_v20  ;;  %v649_v48 = vsub.f32 %v169_v43, %v179_v32  ;;  %v651_v14 = vadd.f32 %v179_v32, %v169_v43 }
  0x2d   :  { %v480_v29 = vpop.eup %479  ;;  %487 = vrcp.f32 %v234_v35  ;;  %v191_v50 = vsub.f32 %v647_v18, %v645_v46  ;;  %v182_v31 = vmin.f32 %v647_v18, %v618_v61  ;;  %v183_v35 = vmax.f32 %v645_v46, %v613_v60 }
  0x2e   :  { %v482_v36 = vpop.eup %481  ;;  %v121_v38 = vmul.f32 0.6931472, %v480_v29  ;;  %v192_v51 = vsub.f32 %v651_v14, %v649_v48  ;;  %v226_v0 = vsub.f32 %v593_v39, %v649_v48  ;;  %v187_v37 = vmax.f32 %v649_v48, %v581_v33 }
  0x2f   :  { %v123_v42 = vmul.f32 0.6931472, %v482_v36  ;;  %v186_v36 = vmin.f32 %v651_v14, %v586_v34  ;;  %v184_v40 = vsub.f32 %v182_v31, %v183_v35 }
  0x30   :  { %v124_v44 = vadd.f32 %v121_v38, %v108_v25  ;;  %v484_v53 = vpop.eup %483  ;;  %v193_v55 = vmul.f32 %v192_v51, %v191_v50  ;;  %v202_v59 = vadd.f32 1e-07, %v192_v51  ;;  %v665_v41 = vsub.f32 %v226_v0, %v651_v14 }
  0x31   :  { %v125_v47 = vadd.f32 %v123_v42, %v109_v30  ;;  %v371_v63 = vmul.f32 0.6931472, %v484_v53  ;;  %v188_v42 = vsub.f32 %v186_v36, %v187_v37 }
  0x32   :  { %v659_v58 = vadd.f32 %v196_v52, %v193_v55  ;;  %489 = vrcp.f32 %v202_v59  ;;  %v204_v19 = vmul.f32 %v202_v59, %v191_v50 }
  0x33   :  { %v126_v49 = vadd.f32 %v125_v47, %v124_v44  ;;  %v372_v12 = vadd.f32 %v371_v63, %v364_v62  ;;  %v185_v44 = vmax.f32 %v184_v40, 0.0  ;;  %v189_v47 = vmax.f32 %v188_v42, 0.0 }
  0x34   :  { %v297_v62 = vand.u32 2147483647, %v551_v6 }
  0x35   :  { %v127_v54 = vrot.slane %v126_v49, 4  ;;  %v373_v21 = vmul.f32 %v372_v12, %v671_v11  ;;  %v190_v52 = vmul.f32 %v189_v47, %v185_v44  ;;  %v212_v12 = vmin.f32 %v645_v46, %v613_v60 }
  0x37   :  { %v128_v57 = vadd.f32 %v127_v54, %v126_v49  ;;  %v374_v24 = vsel %vm283_vm3, %v373_v21, 0.0  ;;  %v205_v49 = vmul.f32 %v603_v45, %v626_v7 }
  0x39   :  { %v486_v1 = vpop.eup %485  ;;  %v129_v4 = vrot.slane %v128_v57, 2  ;;  %v206_v53 = vadd.f32 %v205_v49, %v204_v19 }
  0x3a   :  { %v334_v5 = vmul.f32 0.6931472, %v486_v1  ;;  %v488_v13 = vpop.eup %487 }
  0x3b   :  { %v130_v9 = vadd.f32 %v129_v4, %v128_v57  ;;  %v207_v63 = vsub.f32 %v206_v53, %v190_v52 }
  0x3c   :  { %v335_v10 = vadd.f32 %v334_v5, %v574_v26  ;;  %v237_v26 = vsel %vm233_vm2, %v488_v13, %v635_v17  ;;  %v298_v5 = vsub.f32 0.0, %v297_v62  ;;  %v215_v13 = vmin.f32 %v649_v48, %v581_v33 }
  0x3d   :  { %v131_v3 = vrot.slane %v130_v9, 1  ;;  %v238_v25 = vmul.f32 %v237_v26, %v237_v26 }
  0x3e   :  { %v350_v39 = vsub.f32 %v335_v10, %v349_v8  ;;  %v299_v7 = vmul.f32 1.442695, %v298_v5  ;;  %v211_v10 = vmax.f32 %v647_v18, %v618_v61 }
  0x3f   :  { %v132_v16 = vadd.f32 %v131_v3, %v130_v9  ;;  %v490_v27 = vpop.eup %489  ;;  %v239_v28 = vmul.f32 0.0208351, %v238_v25  ;;  %v214_v3 = vmax.f32 %v651_v14, %v586_v34 }
  0x40   :  { %v351_v20 = vmul.f32 %v350_v39, %v671_v11  ;;  %v251_v29 = vmul.f32 %v490_v27, %v191_v50  ;;  %v208_v50 = vadd.f32 1e-07, %v207_v63 }
  0x41   :  { %v133_v22 = vadd.f32 %v132_v16, %v107_v15  ;;  %v240_v32 = vadd.f32 -0.085133, %v239_v28  ;;  %v216_v21 = vsub.f32 %v214_v3, %v215_v13 }
  0x42   :  { %v352_v23 = vsel %vm283_vm3, %v351_v20, 0.0  ;;  %v253_v30 = vmax.f32 %v251_v29, 1e-07  ;;  %vm252_vm4 = vcmp.gt.f32.partialorder %v251_v29, 1.0  ;;  %v213_v20 = vsub.f32 %v211_v10, %v212_v12 }
  0x43   :  { %353 = vadd.xlane.f32.xlu1 %v352_v23  ;;  %134 = vst [vmem:[#allocation2] sm:$0x1] %v133_v22  ;;  %v241_v38 = vmul.f32 %v240_v32, %v238_v25  ;;  %v218_v28 = vmul.f32 %v216_v21, %v216_v21 }
  0x44   :  { %491 = vrcp.f32 %v253_v30  ;;  %v217_v27 = vmul.f32 %v213_v20, %v213_v20 }
  0x45   :  { %v242_v43 = vadd.f32 0.180141, %v241_v38  ;;  %493 = vrcp.f32 %v208_v50 }
  0x46   :  { %495 = vpow2.f32 %v299_v7  ;;  %v219_v48 = vadd.f32 %v218_v28, %v217_v27 }
  0x47   :  { %375 = vadd.xlane.f32.xlu1 %v374_v24  ;;  %v243_v51 = vmul.f32 %v242_v43, %v238_v25  ;;  %v198_v24 = vsub.f32 %v659_v58, %v190_v52 }
  0x48   :  { %v220_v58 = vadd.f32 1e-07, %v219_v48 }
  0x49   :  { %v244_v56 = vadd.f32 -0.3302995, %v243_v51  ;;  %v199_v14 = vadd.f32 1e-07, %v198_v24 }
  0x4b   :  { %v245_v1 = vmul.f32 %v244_v56, %v238_v25  ;;  %497 = vrcp.f32 %v199_v14 }
  0x4c   :  { %499 = vrcp.f32 %v220_v58 }
  0x4d   :  { %v246_v8 = vadd.f32 0.999866, %v245_v1 }
  0x4f   :  { %v247_v39 = vmul.f32 %v246_v8, %v237_v26  ;;  %v221_v26 = vadd.f32 %v618_v61, %v613_v60  ;;  %v228_v60 = vmul.f32 %v665_v41, %v665_v41 }
  0x51   :  { %v492_v54 = vpop.eup %491  ;;  %v248_v22 = vsub.f32 1.5707964, %v247_v39  ;;  %v222_v38 = vsub.f32 %v221_v26, %v645_v46  ;;  %v294_v46 = vmax.f32 %v551_v6, 0.0 }
  0x52   :  { %v256_v55 = vsel %vm252_vm4, %v492_v54, %v251_v29  ;;  %v494_v31 = vpop.eup %493 }
  0x53   :  { %v257_v57 = vmul.f32 %v256_v55, %v256_v55  ;;  %v249_v30 = vsel %vm233_vm2, %v248_v22, %v247_v39  ;;  %v496_v35 = vpop.eup %495  ;;  %v210_v36 = vmul.f32 %v494_v31, %v190_v52  ;;  %v223_v43 = vsub.f32 %v222_v38, %v647_v18 }
  0x54   :  { %v301_v17 = vadd.f32 1.0, %v496_v35 }
  0x55   :  { %v258_v0 = vmul.f32 0.0208351, %v257_v57  ;;  %v224_v29 = vmul.f32 %v223_v43, %v223_v43  ;;  %v386_v43 = vand.u32 127, %v83_v2 }
  0x56   :  { %501 = vlog2.f32 %v301_v17 }
  0x57   :  { %v259_v4 = vadd.f32 -0.085133, %v258_v0  ;;  %v229_v47 = vadd.f32 %v228_v60, %v224_v29  ;;  %vm390_vm5 = vcmp.eq.s32.totalorder %v386_v43, 1  ;;  %vm387_vm6 = vcmp.eq.s32.totalorder %v386_v43, 0 }
  0x58   :  { %v498_v61 = vpop.eup %497  ;;  %vm394_vm7 = vcmp.eq.s32.totalorder %v386_v43, 2  ;;  %vm398_vm8 = vcmp.eq.s32.totalorder %v386_v43, 3 }
  0x59   :  { %v260_v59 = vmul.f32 %v259_v4, %v257_v57  ;;  %v201_v19 = vmul.f32 %v498_v61, %v190_v52  ;;  %v230_v49 = vmul.f32 0.25, %v229_v47  ;;  %v500_v51 = vpop.eup %499 }
  0x5b   :  { %v261_v45 = vadd.f32 0.180141, %v260_v59  ;;  %v295_v54 = vmul.f32 %v201_v19, %v551_v6  ;;  %v277_v56 = vmul.f32 %v500_v51, %v230_v49  ;;  %v406_v6 = vld [vmem:[#allocation2] sm:$0x1] }
  0x5c   :  { %v408_v8 = vsel %vm283_vm3, %v406_v6, 0.0 }
  0x5d   :  { %v262_v9 = vmul.f32 %v261_v45, %v257_v57  ;;  %v296_v62 = vsub.f32 %v294_v46, %v295_v54 }
  0x5f   :  { %v263_v15 = vadd.f32 -0.3302995, %v262_v9 }
  0x61   :  { %v264_v16 = vmul.f32 %v263_v15, %v257_v57 }
  0x63   :  { %v265_v23 = vadd.f32 0.999866, %v264_v16  ;;  %v502_v53 = vpop.eup %501 }
  0x64   :  { %v303_v63 = vmul.f32 0.6931472, %v502_v53 }
  0x65   :  { %v266_v25 = vmul.f32 %v265_v23, %v256_v55 }
  0x66   :  { %v304_v4 = vadd.f32 %v303_v63, %v296_v62 }
  0x67   :  { %v267_v34 = vsub.f32 1.5707964, %v266_v25 }
  0x68   :  { %v305_v52 = vmul.f32 %v304_v4, %v671_v11 }
  0x69   :  { %v268_v33 = vsel %vm252_vm4, %v267_v34, %v266_v25 }
  0x6a   :  { %v269_v32 = vsub.f32 %v249_v30, %v268_v33  ;;  %v306_v59 = vsel %vm283_vm3, %v305_v52, 0.0 }
  0x6c   :  { %v270_v37 = vmul.f32 %v269_v32, %v269_v32 }
  0x6e   :  { %v271_v40 = vmul.f32 0.40528473, %v270_v37 }
  0x70   :  { %v272_v42 = vsub.f32 %v271_v40, %v210_v36 }
  0x72   :  { %v273_v44 = vadd.f32 1.0000001, %v272_v42 }
  0x74   :  { %503 = vrcp.f32 %v273_v44 }
  0x81   :  { %v504_v55 = vpop.eup %503 }
  0x82   :  { %v275_v18 = vmul.f32 %v504_v55, %v271_v40 }
  0x84   :  { %v278_v57 = vmul.f32 %v275_v18, %v271_v40 }
  0x86   :  { %v279_v0 = vadd.f32 %v278_v57, %v277_v56 }
  0x88   :  { %v280_v1 = vsub.f32 %v210_v36, %v279_v0 }
  0x8a   :  { %v281_v41 = vsub.f32 1.0, %v280_v1 }
  0x8c   :  { %v282_v5 = vmul.f32 %v281_v41, %v671_v11 }
  0x8e   :  { %v284_v50 = vsel %vm283_vm3, %v282_v5, 0.0 }
  0x8f   :  { %285 = vadd.xlane.f32.xlu0 %v284_v50 }
  0x93   :  { %307 = vadd.xlane.f32.xlu0 %v306_v59 }
  0x97   :  { %409 = vadd.xlane.f32.xlu0 %v408_v8 }
  0xcc   :  { %v354_v45 = vpop.xlane.xlu1 %353 }
  0xcd   :  { %v355_v9 = vrot.slane %v354_v45, 4 }
  0xcf   :  { %v356_v12 = vadd.f32 %v355_v9, %v354_v45 }
  0xd0   :  { %v376_v7 = vpop.xlane.xlu1 %375 }
  0xd1   :  { %v377_v10 = vrot.slane %v376_v7, 4  ;;  %v357_v11 = vrot.slane %v356_v12, 2 }
  0xd3   :  { %v378_v13 = vadd.f32 %v377_v10, %v376_v7  ;;  %v358_v27 = vadd.f32 %v357_v11, %v356_v12 }
  0xd5   :  { %v379_v20 = vrot.slane %v378_v13, 2  ;;  %v359_v26 = vrot.slane %v358_v27, 1 }
  0xd7   :  { %v380_v28 = vadd.f32 %v379_v20, %v378_v13  ;;  %v360_v38 = vadd.f32 %v359_v26, %v358_v27 }
  0xd9   :  { %v381_v36 = vrot.slane %v380_v28, 1 }
  0xdb   :  { %v382_v40 = vadd.f32 %v381_v36, %v380_v28 }
 0x118   :  { %v286_v3 = vpop.xlane.xlu0 %285 }
 0x119   :  { %v287_v39 = vrot.slane %v286_v3, 4 }
 0x11b   :  { %v288_v15 = vadd.f32 %v287_v39, %v286_v3 }
 0x11c   :  { %v308_v16 = vpop.xlane.xlu0 %307 }
 0x11d   :  { %v289_v21 = vrot.slane %v288_v15, 2  ;;  %v309_v22 = vrot.slane %v308_v16, 4 }
 0x11f   :  { %v310_v23 = vadd.f32 %v309_v22, %v308_v16  ;;  %v290_v24 = vadd.f32 %v289_v21, %v288_v15 }
 0x120   :  { %v410_v25 = vpop.xlane.xlu0 %409 }
 0x121   :  { %v311_v30 = vrot.slane %v310_v23, 2  ;;  %v291_v34 = vrot.slane %v290_v24, 1  ;;  %v411_v14 = vrot.slane %v410_v25, 4 }
 0x123   :  { %v292_v31 = vadd.f32 %v291_v34, %v290_v24  ;;  %v412_v33 = vadd.f32 %v411_v14, %v410_v25  ;;  %v312_v48 = vadd.f32 %v311_v30, %v310_v23 }
 0x125   :  { %446 = vpush %v292_v31  ;;  %v413_v32 = vrot.slane %v412_v33, 2  ;;  %v313_v35 = vrot.slane %v312_v48, 1 }
 0x127   :  { %v414_v37 = vadd.f32 %v413_v32, %v412_v33  ;;  %v314_v58 = vadd.f32 %v313_v35, %v312_v48 }
 0x129   :  { %448 = vpush %v314_v58  ;;  %v415_v17 = vrot.slane %v414_v37, 1 }
 0x12a   :  { %450 = vpush %v360_v38 }
 0x12b   :  { %452 = vpush %v382_v40  ;;  %v416_v42 = vadd.f32 %v415_v17, %v414_v37 }
 0x12d   :  { %454 = vpush %v416_v42 }
 0x156   :  { %s447_s0 = spop %446 }
 0x157   :  { %v391_v44 = vstv %s447_s0 }
 0x158   :  { %v392_v47 = vsel %vm390_vm5, %v391_v44, 0.0 }
 0x15a   :  { %s449_s25 = spop %448 }
 0x15b   :  { %s451_s1 = spop %450  ;;  %v395_v61 = vstv %s449_s25 }
 0x15c   :  { %s453_s4 = spop %452  ;;  %v399_v49 = vstv %s451_s1  ;;  %v396_v53 = vsel %vm394_vm7, %v395_v61, 0.0 }
 0x15d   :  { %v384_v29 = vstv %s453_s4  ;;  %v400_v54 = vsel %vm398_vm8, %v399_v49, 0.0 }
 0x15e   :  { %v388_v60 = vsub.f32 0.0, %v384_v29  ;;  %s455_s3 = spop %454 }
 0x15f   :  { %v422_v55 = vstv %s455_s3 }
 0x160   :  { %v389_v19 = vsel %vm387_vm6, %v388_v60, 0.0  ;;  %v423_v56 = vsel %vm387_vm6, %v422_v55, 0.0 }
 0x161   :  { %v393_v51 = vadd.f32 %v392_v47, %v389_v19 }
 0x163   :  { %v397_v46 = vadd.f32 %v396_v53, %v393_v51 }
 0x165   :  { %v401_v2 = vadd.f32 %v400_v54, %v397_v46 }
 0x167   :  { %402 = vst [vmem:[#allocation3] sm:$0x1] %v401_v2 }
 0x16e   :  { %v420_v18 = vld [vmem:[#allocation3] sm:$0x1] }
 0x16f   :  { %v424_v57 = vadd.f32 %v423_v56, %v420_v18 }
 0x171   :  { %425 = vst [vmem:[%s729_s5] sm:$0x1] %v424_v57 }

</bundles_post_ra>
